<compile_context>
chip_gen: v6e
topology: v6e:2x2x1
jax: 0.10.0
libtpu: 0.0.40
codegen_flags: <defaults>
</compile_context>

<pallas_src>
import jax
import jax.numpy as jnp
from jax.experimental import pallas as pl
from jax.experimental.pallas import tpu as pltpu

LEAKY_SLOPE = 0.01  # PyTorch nn.LeakyReLU default negative_slope


def _leaky_relu(x):
    return jnp.where(x > 0, x, LEAKY_SLOPE * x)


def _pick_out_tile(out_dim, max_tile=1536):
    """Largest lane-aligned (multiple of 128) divisor of out_dim <= max_tile."""
    if out_dim <= max_tile or out_dim % 128 != 0:
        return out_dim
    for t in range(max_tile - max_tile % 128, 0, -128):
        if out_dim % t == 0:
            return t
    return out_dim


def decoder_kernel(x_ref, w1_ref, b1_ref, w2_ref, b2_ref, w3_ref, b3_ref,
                   o_ref, h1_ref, acc_ref):
    k = pl.program_id(1)

    @pl.when(k == 0)
    def _init():
        # Layer 1 is tiny (LATENT x 1024): recompute at the start of every
        # reduction sweep so the h1 scratch is valid regardless of how the
        # parallel output axis is sharded across TensorCores.
        h1 = jnp.dot(x_ref[...].astype(jnp.bfloat16), w1_ref[...],
                     preferred_element_type=jnp.float32) + b1_ref[...]
        h1_ref[...] = _leaky_relu(h1)
        acc_ref[...] = jnp.zeros_like(acc_ref)

    # Layer 2, one TK-wide chunk of the 2048-dim hidden: (B, TK).
    h2 = jnp.dot(h1_ref[...].astype(jnp.bfloat16), w2_ref[...],
                 preferred_element_type=jnp.float32) + b2_ref[...]
    h2 = _leaky_relu(h2).astype(jnp.bfloat16)

    # Layer 3 partial product for this chunk, accumulated in f32.
    acc_ref[...] += jnp.dot(h2, w3_ref[...], preferred_element_type=jnp.float32)

    @pl.when(k == pl.num_programs(1) - 1)
    def _finalize():
        o_ref[...] = (acc_ref[...] + b3_ref[...]).astype(o_ref.dtype)


def decoder_forward(x, params, num_points, *, tk=512):
    """x: (B, LATENT) float32 -> (B, NUM_POINTS, 3) float32."""
    w1, b1, w2, b2, w3, b3 = params
    B, latent = x.shape
    h1_dim = w1.shape[1]   # 1024
    h2_dim = w2.shape[1]   # 2048
    out_dim = w3.shape[1]  # NUM_POINTS * 3
    assert out_dim == num_points * 3

    tk = min(tk, h2_dim)
    assert h2_dim % tk == 0, (h2_dim, tk)
    tn = _pick_out_tile(out_dim)
    n_tiles = out_dim // tn
    k_tiles = h2_dim // tk

    # Stream weights in bf16 (memory-bound kernel: halves HBM traffic);
    # biases and accumulation stay f32.
    bf = jnp.bfloat16
    w1b, w2b, w3b = w1.astype(bf), w2.astype(bf), w3.astype(bf)

    grid_spec = pltpu.PrefetchScalarGridSpec(
        num_scalar_prefetch=0,
        grid=(n_tiles, k_tiles),
        in_specs=[
            # Small, grid-invariant inputs: loaded once (block index constant).
            pl.BlockSpec((B, latent), lambda i, k: (0, 0)),
            pl.BlockSpec((latent, h1_dim), lambda i, k: (0, 0)),
            pl.BlockSpec((1, h1_dim), lambda i, k: (0, 0)),
            # Streamed weight/bias tiles for the fused layer-2/3 reduction.
            pl.BlockSpec((h1_dim, tk), lambda i, k: (0, k)),
            pl.BlockSpec((1, tk), lambda i, k: (0, k)),
            pl.BlockSpec((tk, tn), lambda i, k: (k, i)),
            pl.BlockSpec((1, tn), lambda i, k: (0, i)),
        ],
        out_specs=pl.BlockSpec((B, tn), lambda i, k: (0, i)),
        scratch_shapes=[
            pltpu.VMEM((B, h1_dim), jnp.float32),  # h1 (layer-1 activations)
            pltpu.VMEM((B, tn), jnp.float32),      # layer-3 accumulator
        ],
    )

    flat = pl.pallas_call(
        decoder_kernel,
        out_shape=jax.ShapeDtypeStruct((B, out_dim), jnp.float32),
        grid_spec=grid_spec,
        compiler_params=pltpu.CompilerParams(
            dimension_semantics=("parallel", "arbitrary")),
    )(x, w1b, b1, w2b, b2, w3b, b3)

    return flat.reshape(B, num_points, 3)


def init_params(key, latent_space, num_points):
    """Deterministic synthetic init (shapes match nn.Linear layers)."""
    dims = [(latent_space, 1024), (1024, 2048), (2048, num_points * 3)]
    params = []
    for fan_in, fan_out in dims:
        kw, kb, key = jax.random.split(key, 3)
        bound = 1.0 / jnp.sqrt(fan_in)
        w = jax.random.uniform(kw, (fan_in, fan_out), jnp.float32, -bound, bound)
        b = jax.random.uniform(kb, (1, fan_out), jnp.float32, -bound, bound)
        params += [w, b]
    return tuple(params)


def decoder_reference(x, params):
    """Plain-JAX reference mirroring the kernel's bf16-weight / f32-accum math."""
    w1, b1, w2, b2, w3, b3 = params
    bf = jnp.bfloat16
    h1 = _leaky_relu(jnp.dot(x.astype(bf), w1.astype(bf),
                             preferred_element_type=jnp.float32) + b1)
    h2 = _leaky_relu(jnp.dot(h1.astype(bf), w2.astype(bf),
                             preferred_element_type=jnp.float32) + b2)
    return jnp.dot(h2.astype(bf), w3.astype(bf),
                   preferred_element_type=jnp.float32) + b3


if __name__ == "__main__":
    LATENT_SPACE = 32
    NUM_POINTS = 128
    BATCH = 2

    key = jax.random.PRNGKey(0)
    k_x, k_p = jax.random.split(key)

    x = jax.random.normal(k_x, (BATCH, LATENT_SPACE), dtype=jnp.float32)
    params = init_params(k_p, LATENT_SPACE, NUM_POINTS)

    out = decoder_forward(x, params, NUM_POINTS)
    out = jax.block_until_ready(out)

    assert out.shape == (BATCH, NUM_POINTS, 3), out.shape

    ref = decoder_reference(x, params).reshape(BATCH, NUM_POINTS, 3)
    max_err = float(jnp.max(jnp.abs(out - ref)))
    assert jnp.allclose(out, ref, atol=1e-2, rtol=1e-2), (
        f"mismatch vs reference, max abs err {max_err}")

    print("KERNEL_OK")
</pallas_src>

<mosaic_0001>
module attributes {stable_mosaic.version = 11 : i64} {
  func.func @decoder_kernel(%arg0: i32, %arg1: i32, %arg2: memref<2x32xf32, #tpu.memory_space<vmem>>, %arg3: memref<32x1024xbf16, #tpu.memory_space<vmem>>, %arg4: memref<1x1024xf32, #tpu.memory_space<vmem>>, %arg5: memref<1024x512xbf16, #tpu.memory_space<vmem>>, %arg6: memref<1x512xf32, #tpu.memory_space<vmem>>, %arg7: memref<512x384xbf16, #tpu.memory_space<vmem>>, %arg8: memref<1x384xf32, #tpu.memory_space<vmem>>, %arg9: memref<2x384xf32, #tpu.memory_space<vmem>>, %arg10: memref<2x1024xf32, #tpu.memory_space<vmem>>, %arg11: memref<2x384xf32, #tpu.memory_space<vmem>>) attributes {dimension_semantics = [#tpu.dimension_semantics<parallel>, #tpu.dimension_semantics<arbitrary>], iteration_bounds = array<i64: 1, 4>, scalar_prefetch = 0 : i64, scratch_operands = 2 : i64, tpu.core_type = #tpu.core_type<tc>, window_params = [{pipeline_mode = #tpu.pipeline_mode<synchronous>, transform_indices = @transform_0, window_bounds = array<i64: 2, 32>}, {pipeline_mode = #tpu.pipeline_mode<synchronous>, transform_indices = @transform_1, window_bounds = array<i64: 32, 1024>}, {pipeline_mode = #tpu.pipeline_mode<synchronous>, transform_indices = @transform_2, window_bounds = array<i64: 1, 1024>}, {transform_indices = @transform_3, window_bounds = array<i64: 1024, 512>}, {transform_indices = @transform_4, window_bounds = array<i64: 1, 512>}, {transform_indices = @transform_5, window_bounds = array<i64: 512, 384>}, {transform_indices = @transform_6, window_bounds = array<i64: 1, 384>}, {transform_indices = @transform_7, window_bounds = array<i64: 2, 384>}]} {
    %c0_i32 = arith.constant 0 : i32
    %0 = arith.cmpi eq, %arg1, %c0_i32 : i32
    %1 = arith.extui %0 : i1 to i32
    %c0_i32_0 = arith.constant 0 : i32
    %2 = arith.cmpi ne, %1, %c0_i32_0 : i32
    scf.if %2 {
      %c0_16 = arith.constant 0 : index
      %c0_17 = arith.constant 0 : index
      %24 = vector.load %arg2[%c0_16, %c0_17] : memref<2x32xf32, #tpu.memory_space<vmem>>, vector<2x32xf32>
      %25 = arith.truncf %24 : vector<2x32xf32> to vector<2x32xbf16>
      %c0_18 = arith.constant 0 : index
      %c0_19 = arith.constant 0 : index
      %26 = vector.load %arg3[%c0_18, %c0_19] : memref<32x1024xbf16, #tpu.memory_space<vmem>>, vector<32x1024xbf16>
      %cst_20 = arith.constant dense<0.000000e+00> : vector<2x1024xf32>
      %27 = tpu.matmul %25, %26, %cst_20 {dimension_numbers = #tpu.dot_dimension_numbers<[1], [0], [0], [1], [0, 0, 1, 1], [], []>} : vector<2x32xbf16>, vector<32x1024xbf16>, vector<2x1024xf32> -> vector<2x1024xf32>
      %c0_21 = arith.constant 0 : index
      %c0_22 = arith.constant 0 : index
      %28 = vector.load %arg4[%c0_21, %c0_22] : memref<1x1024xf32, #tpu.memory_space<vmem>>, vector<1x1024xf32>
      %29 = vector.broadcast %28 : vector<1x1024xf32> to vector<2x1024xf32>
      %30 = arith.addf %27, %29 : vector<2x1024xf32>
      %cst_23 = arith.constant 0.000000e+00 : f32
      %31 = vector.broadcast %cst_23 : f32 to vector<2x1024xf32>
      %32 = arith.cmpf ogt, %30, %31 : vector<2x1024xf32>
      %cst_24 = arith.constant 0.00999999977 : f32
      %33 = vector.broadcast %cst_24 : f32 to vector<2x1024xf32>
      %34 = arith.mulf %33, %30 : vector<2x1024xf32>
      %35 = arith.select %32, %30, %34 : vector<2x1024xi1>, vector<2x1024xf32>
      %c0_25 = arith.constant 0 : index
      %c0_26 = arith.constant 0 : index
      %36 = vector.load %arg10[%c0_25, %c0_26] : memref<2x1024xf32, #tpu.memory_space<vmem>>, vector<2x1024xf32>
      tpu.vector_store %arg10[%c0_25, %c0_26], %35 {strides = array<i32>} : memref<2x1024xf32, #tpu.memory_space<vmem>>, vector<2x1024xf32>,
      %cst_27 = arith.constant 0.000000e+00 : f32
      %37 = vector.broadcast %cst_27 : f32 to vector<2x384xf32>
      %c0_28 = arith.constant 0 : index
      %c0_29 = arith.constant 0 : index
      %38 = vector.load %arg11[%c0_28, %c0_29] : memref<2x384xf32, #tpu.memory_space<vmem>>, vector<2x384xf32>
      tpu.vector_store %arg11[%c0_28, %c0_29], %37 {strides = array<i32>} : memref<2x384xf32, #tpu.memory_space<vmem>>, vector<2x384xf32>,
    } else {
    }
    %c0 = arith.constant 0 : index
    %c0_1 = arith.constant 0 : index
    %3 = vector.load %arg10[%c0, %c0_1] : memref<2x1024xf32, #tpu.memory_space<vmem>>, vector<2x1024xf32>
    %4 = arith.truncf %3 : vector<2x1024xf32> to vector<2x1024xbf16>
    %c0_2 = arith.constant 0 : index
    %c0_3 = arith.constant 0 : index
    %5 = vector.load %arg5[%c0_2, %c0_3] : memref<1024x512xbf16, #tpu.memory_space<vmem>>, vector<1024x512xbf16>
    %cst = arith.constant dense<0.000000e+00> : vector<2x512xf32>
    %6 = tpu.matmul %4, %5, %cst {dimension_numbers = #tpu.dot_dimension_numbers<[1], [0], [0], [1], [0, 0, 1, 1], [], []>} : vector<2x1024xbf16>, vector<1024x512xbf16>, vector<2x512xf32> -> vector<2x512xf32>
    %c0_4 = arith.constant 0 : index
    %c0_5 = arith.constant 0 : index
    %7 = vector.load %arg6[%c0_4, %c0_5] : memref<1x512xf32, #tpu.memory_space<vmem>>, vector<1x512xf32>
    %8 = vector.broadcast %7 : vector<1x512xf32> to vector<2x512xf32>
    %9 = arith.addf %6, %8 : vector<2x512xf32>
    %cst_6 = arith.constant 0.000000e+00 : f32
    %10 = vector.broadcast %cst_6 : f32 to vector<2x512xf32>
    %11 = arith.cmpf ogt, %9, %10 : vector<2x512xf32>
    %cst_7 = arith.constant 0.00999999977 : f32
    %12 = vector.broadcast %cst_7 : f32 to vector<2x512xf32>
    %13 = arith.mulf %12, %9 : vector<2x512xf32>
    %14 = arith.select %11, %9, %13 : vector<2x512xi1>, vector<2x512xf32>
    %15 = arith.truncf %14 : vector<2x512xf32> to vector<2x512xbf16>
    %c0_8 = arith.constant 0 : index
    %c0_9 = arith.constant 0 : index
    %16 = vector.load %arg11[%c0_8, %c0_9] : memref<2x384xf32, #tpu.memory_space<vmem>>, vector<2x384xf32>
    %c0_10 = arith.constant 0 : index
    %c0_11 = arith.constant 0 : index
    %17 = vector.load %arg7[%c0_10, %c0_11] : memref<512x384xbf16, #tpu.memory_space<vmem>>, vector<512x384xbf16>
    %cst_12 = arith.constant dense<0.000000e+00> : vector<2x384xf32>
    %18 = tpu.matmul %15, %17, %cst_12 {dimension_numbers = #tpu.dot_dimension_numbers<[1], [0], [0], [1], [0, 0, 1, 1], [], []>} : vector<2x512xbf16>, vector<512x384xbf16>, vector<2x384xf32> -> vector<2x384xf32>
    %19 = arith.addf %16, %18 : vector<2x384xf32>
    %c0_13 = arith.constant 0 : index
    %c0_14 = arith.constant 0 : index
    %20 = vector.load %arg11[%c0_13, %c0_14] : memref<2x384xf32, #tpu.memory_space<vmem>>, vector<2x384xf32>
    tpu.vector_store %arg11[%c0_13, %c0_14], %19 {strides = array<i32>} : memref<2x384xf32, #tpu.memory_space<vmem>>, vector<2x384xf32>,
    %c3_i32 = arith.constant 3 : i32
    %21 = arith.cmpi eq, %arg1, %c3_i32 : i32
    %22 = arith.extui %21 : i1 to i32
    %c0_i32_15 = arith.constant 0 : i32
    %23 = arith.cmpi ne, %22, %c0_i32_15 : i32
    scf.if %23 {
      %c0_16 = arith.constant 0 : index
      %c0_17 = arith.constant 0 : index
      %24 = vector.load %arg11[%c0_16, %c0_17] : memref<2x384xf32, #tpu.memory_space<vmem>>, vector<2x384xf32>
      %c0_18 = arith.constant 0 : index
      %c0_19 = arith.constant 0 : index
      %25 = vector.load %arg8[%c0_18, %c0_19] : memref<1x384xf32, #tpu.memory_space<vmem>>, vector<1x384xf32>
      %26 = vector.broadcast %25 : vector<1x384xf32> to vector<2x384xf32>
      %27 = arith.addf %24, %26 : vector<2x384xf32>
      %c0_20 = arith.constant 0 : index
      %c0_21 = arith.constant 0 : index
      %28 = vector.load %arg9[%c0_20, %c0_21] : memref<2x384xf32, #tpu.memory_space<vmem>>, vector<2x384xf32>
      tpu.vector_store %arg9[%c0_20, %c0_21], %27 {strides = array<i32>} : memref<2x384xf32, #tpu.memory_space<vmem>>, vector<2x384xf32>,
    } else {
    }
    return
  }
  func.func @transform_0(%arg0: i32, %arg1: i32) -> (i32, i32) {
    %c0_i32 = arith.constant 0 : i32
    %c0_i32_0 = arith.constant 0 : i32
    %c0_i32_1 = arith.constant 0 : i32
    return %c0_i32, %c0_i32_0 : i32, i32
  }
  func.func @transform_1(%arg0: i32, %arg1: i32) -> (i32, i32) {
    %c0_i32 = arith.constant 0 : i32
    %c0_i32_0 = arith.constant 0 : i32
    %c0_i32_1 = arith.constant 0 : i32
    return %c0_i32, %c0_i32_0 : i32, i32
  }
  func.func @transform_2(%arg0: i32, %arg1: i32) -> (i32, i32) {
    %c0_i32 = arith.constant 0 : i32
    %c0_i32_0 = arith.constant 0 : i32
    %c0_i32_1 = arith.constant 0 : i32
    return %c0_i32, %c0_i32_0 : i32, i32
  }
  func.func @transform_3(%arg0: i32, %arg1: i32) -> (i32, i32) {
    %c0_i32 = arith.constant 0 : i32
    %c0_i32_0 = arith.constant 0 : i32
    return %c0_i32, %arg1 : i32, i32
  }
  func.func @transform_4(%arg0: i32, %arg1: i32) -> (i32, i32) {
    %c0_i32 = arith.constant 0 : i32
    %c0_i32_0 = arith.constant 0 : i32
    return %c0_i32, %arg1 : i32, i32
  }
  func.func @transform_5(%arg0: i32, %arg1: i32) -> (i32, i32) {
    %c0_i32 = arith.constant 0 : i32
    return %arg1, %arg0 : i32, i32
  }
  func.func @transform_6(%arg0: i32, %arg1: i32) -> (i32, i32) {
    %c0_i32 = arith.constant 0 : i32
    %c0_i32_0 = arith.constant 0 : i32
    return %c0_i32, %arg0 : i32, i32
  }
  func.func @transform_7(%arg0: i32, %arg1: i32) -> (i32, i32) {
    %c0_i32 = arith.constant 0 : i32
    %c0_i32_0 = arith.constant 0 : i32
    return %c0_i32, %arg0 : i32, i32
  }
}

</mosaic_0001>

<bundles_post_ra>
// kernel: tpu_custom_call.1
= control target key start
LH: loop header
LB: loop body
LE: loop exit
PB: predicated region body
PF: predicated region fallthrough
CT: control target
= control target key end

     0   :  { %s5901_s0 = inlined_call_operand.hbm [shape: f32[2,32], index: 0, kind: input, shape index: {}]   ;;  %s5902_s1 = inlined_call_operand.hbm [shape: bf16[32,1024], index: 1, kind: input, shape index: {}]   ;;  %s5903_s2 = inlined_call_operand.hbm [shape: f32[1,1024], index: 2, kind: input, shape index: {}]   ;;  %s5904_s3 = inlined_call_operand.hbm [shape: bf16[1024,2048], index: 3, kind: input, shape index: {}]   ;;  %s5905_s4 = inlined_call_operand.hbm [shape: f32[1,2048], index: 4, kind: input, shape index: {}]   ;;  %s5906_s5 = inlined_call_operand.hbm [shape: bf16[2048,384], index: 5, kind: input, shape index: {}]   ;;  %s5907_s6 = inlined_call_operand.hbm [shape: f32[1,384], index: 6, kind: input, shape index: {}]   ;;  %s5908_s7 = inlined_call_operand.hbm [shape: f32[2,384], index: 7, kind: output, shape index: {}]  }
   0x1   :  { %5913 = sst [smem:[#allocation24_spill]] %s5902_s1 }
   0x2   :  { %5914 = sst [smem:[#allocation25_spill]] %s5904_s3 }
   0x3   :  { %5915 = sst [smem:[#allocation26_spill]] %s5907_s6 }
   0x4   :  { %12 = vsyncpa [#allocation5], 0 }
   0x5   :  { %13 = vsyncpa [#allocation8], 0 }
   0x6   :  { %14 = vsyncpa [#allocation11], 0 }
   0x7   :  { %16 = vsyncpa [#allocation11 + $0x1], 0 }
   0x8   :  { %17 = vsyncpa [#allocation14], 0 }
   0x9   :  { %19 = vsyncpa [#allocation14 + $0x1], 0 }
   0xa   :  { %20 = vsyncpa [#allocation6], 0  ;;  %s5241_s24 = smov 0   ;;  %s5243_s25 = smov 0  }
   0xb   :  { %s5245_s26 = smov 0   ;;  %s5247_s27 = smov 0  }
   0xc   :  { %s5249_s28 = smov 0   ;;  %s5251_s29 = smov 0  }
   0xd LB: > { %s5270_s30 = sadd.s32 4294967295, %s5180_s29   ;;  %p121_p0 = scmp.ne.s32.totalorder %s5164_s25, %s5160_s24  ;;  %s5180_s29 = sphi %s5251_s29, %s26_s29   ;;  %s5176_s28 = sphi %s5249_s28, %s5938_s28   ;;  %s5172_s27 = sphi %s5247_s27, %s5937_s27   ;;  %s5168_s26 = sphi %s5245_s26, %s5936_s26   ;;  %s5164_s25 = sphi %s5243_s25, %s5935_s25   ;;  %s5160_s24 = sphi %s5241_s24, %s5934_s24  }
   0xe   : > { %p5911_p1 = scmp.eq.s32.totalorder %s5270_s30, 0  ;;  %p3811_p2 = scmp.ge.s32.totalorder %s5180_s29, 1 }
   0xf   : > { %p238_p3 = scmp.lt.s32.totalorder %s5180_s29, 5  ;;  %s5182_s10 = smov [#allocation7]  }
  0x10   : > { %p5278_p4 = por %p5911_p1, %p121_p0  ;;  %s261_s11 = sshll.u32 %s5182_s10, 4  ;;  %s262_s11 = int_to_ptr.vmem [resolvable:$true] %s261_s11 }
  0x11   : > { %p5282_p5 = pnand %p3811_p2, %p238_p3  ;;  %s5183_s13 = smov [#allocation15]  }
  0x12   : > { %s289_s14 = sshll.u32 %s5183_s13, 4  ;;  %s4909_s15 = scalar_lea.vmem %s262_s11, 2048  ;;  %s290_s14 = int_to_ptr.vmem [resolvable:$true] %s289_s14 }
  0x13   : > { %p4286_p6 = pneg %p5282_p5  ;;  %p4910_p9 = scmp.ne.s32.totalorder %s262_s11, %s4909_s15 }
  0x14   : > { %p4917_p12 = scmp.lt.s32.totalorder %s262_s11, %s262_s11  ;;  %p4918_p13 = scmp.lt.s32.totalorder %s4909_s15, %s4909_s15 }
  0x15   : > { %p5290_p7 = pnand %p4286_p6, %p5911_p1 }
  0x16   : > { %p4919_p0 = por %p4918_p13, %p4917_p12 }
  0x17   : > { %p4900_p8 = pneg %p5290_p7 }
  0x19   : > { %p4912_p10 = pnand %p4910_p9, %p4900_p8 }
  0x1b   : > { %p4913_p11 = pneg %p4912_p10 }
  0x1d   : > { %p4920_p2 = pnand %p4919_p0, %p4913_p11 }
  0x1f   : > { %4923 = shalt.err (!%p4920_p2)
}
  0x20   : > { %s5184_s16 = smov 512   ;;  %s5185_s17 = smov 32  }
  0x21   : > { %s5919_s1 = sld [smem:[#allocation24_spill]]  ;;  %s4935_s20 = scalar_lea.vmem %s290_s14, 48 }
  0x22   : > { %p4936_p3 = scmp.ne.s32.totalorder %s290_s14, %s4935_s20  ;;  %s4942_s21 = scalar_lea.vmem %s290_s14, 64 }
  0x23   : > { %p4943_p10 = scmp.lt.s32.totalorder %s290_s14, %s290_s14  ;;  %p4944_p12 = scmp.lt.s32.totalorder %s4942_s21, %s4935_s20 }
  0x24   : > { %p4938_p6 = pnand %p4936_p3, %p4900_p8 }
  0x25   : > { %p4945_p11 = por %p4944_p12, %p4943_p10 }
  0x26   : > { %p4939_p9 = pneg %p4938_p6 }
  0x27   : > { %4292 = dma.hbm_to_vmem [thread:$0]  (!%p5290_p7), %s5919_s1, 2048, %s262_s11, [#allocation8], %s5184_s16, %s5184_s16, %s5185_s17  }
  0x28   : > { %p4946_p13 = pnand %p4945_p11, %p4939_p9 }
  0x2a   : > { %4949 = shalt.err (!%p4946_p13)
}
  0x2b   : > { %s5920_s6 = sld [smem:[#allocation26_spill]]  ;;  %s35_s24 = sadd.s32 1, %s5176_s28 }
  0x2c   : > { %s108_s10 = sadd.s32 1, %s5168_s26  ;;  %p36_p0 = scmp.ge.s32.totalorder %s35_s24, 4 }
  0x2d   : > { %p115_p2 = scmp.ne.s32.totalorder %s5168_s26, %s5164_s25  ;;  %p116_p3 = scmp.eq.s32.totalorder %s5180_s29, 0 }
  0x2e   : > { %p4313_p6 = scmp.lt.s32.totalorder %s5180_s29, 4  ;;  %s5940_s24 = smov (%p36_p0, %s35_s24), 0 }
  0x2f   : > { %5921 = sst [smem:[#allocation23_spill]] %s5940_s24  ;;  %p117_p9 = por %p116_p3, %p115_p2 }
  0x30   : > { %s5909_s11 = sand.u32 1, %s5180_s29   ;;  %s105_s13 = ssub.s32 %s5176_s28, %s5940_s24 }
  0x31   : > { %4298 = dma.hbm_to_vmem [thread:$0]  (!%p5290_p7), %s5920_s6, 48, %s290_s14, [#allocation14]  }
  0x32   : > { %p106_p10 = scmp.eq.s32.totalorder %s105_s13, 0  ;;  %s5324_s15 = sand.u32 1, %s5168_s26  }
  0x33   : > { %s3817_s16 = sshll.u32 %s5324_s15, 11  ;;  %s4211_s14 = sshll.u32 %s5176_s28, 8 }
  0x34   : > { %s5329_s17 = scalar_select %p106_p10, %s5168_s26, %s108_s10  }
  0x35   : > { %s5922_s3 = sld [smem:[#allocation25_spill]]  ;;  %s304_s21 = scalar_lea.vmem [#allocation10], %s3817_s16 }
  0x36   : > { %s311_s22 = sshll.u32 %s304_s21, 4  ;;  %p5336_p12 = pnand %p4313_p6, %p117_p9  ;;  %s312_s22 = int_to_ptr.vmem [resolvable:$true] %s311_s22 }
  0x37   : > { %s5342_s13 = scalar_lea.sflag [#allocation11], %s5909_s11  ;;  %s4963_s10 = scalar_lea.vmem %s312_s22, 32768 }
  0x38   : > { %p5912_p11 = pneg %p5336_p12  ;;  %p4964_p13 = scmp.ne.s32.totalorder %s312_s22, %s4963_s10 }
  0x39   : > { %s5186_s16 = smov [#allocation10]  }
  0x3a   : > { %p4966_p0 = pnand %p4964_p13, %p5912_p11 }
  0x3b   : > { %s310_s20 = scalar_lea.hbm %s5922_s3, %s4211_s14  ;;  %s4968_s14 = sshll.u32 %s5186_s16, 4  ;;  %s4969_s14 = int_to_ptr.vmem [resolvable:$false] %s4968_s14 }
  0x3c   : > { %p4967_p2 = pneg %p4966_p0  ;;  %s4970_s18 = scalar_lea.vmem %s4969_s14, 65536 }
  0x3d   : > { %p4971_p3 = scmp.lt.s32.totalorder %s312_s22, %s4969_s14  ;;  %p4972_p6 = scmp.lt.s32.totalorder %s4970_s18, %s4963_s10 }
  0x3f   : > { %p4973_p9 = por %p4972_p6, %p4971_p3 }
  0x41   : > { %p4974_p10 = pnand %p4973_p9, %p4967_p2 }
  0x43   : > { %4977 = shalt.err (!%p4974_p10)
}
  0x44   : > { %s5187_s19 = smov 1024   ;;  %s5188_s21 = smov 256  }
  0x45   : > { %s5189_s11 = smov 16   ;;  %s5190_s1 = smov [#allocation4]  }
  0x46   : > { %4302 = dma.hbm_to_vmem [thread:$0]  (!%p5336_p12), %s310_s20, 32768, %s312_s22, %s5342_s13, %s5187_s19, %s5188_s21, %s5189_s11  }
  0x47   : > { %s251_s3 = sshll.u32 %s5190_s1, 4  ;;  %s5191_s6 = smov [#allocation9]   ;;  %s252_s3 = int_to_ptr.vmem [resolvable:$true] %s251_s3 }
  0x48   : > { %s275_s16 = sshll.u32 %s5191_s6, 4  ;;  %s4989_s24 = scalar_lea.vmem %s252_s3, 32  ;;  %s276_s16 = int_to_ptr.vmem [resolvable:$true] %s275_s16 }
  0x49   : > { %p4990_p13 = scmp.ne.s32.totalorder %s252_s3, %s4989_s24  ;;  %p4997_p3 = scmp.lt.s32.totalorder %s252_s3, %s252_s3 }
  0x4a   : > { %p4998_p6 = scmp.lt.s32.totalorder %s4989_s24, %s4989_s24 }
  0x4b   : > { %p4992_p0 = pnand %p4990_p13, %p4900_p8 }
  0x4c   : > { %p4999_p9 = por %p4998_p6, %p4997_p3 }
  0x4d   : > { %p4993_p2 = pneg %p4992_p0 }
  0x4f   : > { %p5000_p10 = pnand %p4999_p9, %p4993_p2 }
  0x51   : > { %5003 = shalt.err (!%p5000_p10)
}
  0x52   : > { %4289 = dma.hbm_to_vmem [thread:$0]  (!%p5290_p7), %s5901_s0, 32, %s252_s3, [#allocation5]  }
  0x53   : > { %s3820_s1 = sshll.u32 %s5324_s15, 2  ;;  %s5015_s6 = scalar_lea.vmem %s276_s16, 128 }
  0x54   : > { %p5016_p1 = scmp.ne.s32.totalorder %s276_s16, %s5015_s6  ;;  %p5023_p11 = scmp.lt.s32.totalorder %s276_s16, %s276_s16 }
  0x55   : > { %p5024_p3 = scmp.lt.s32.totalorder %s5015_s6, %s5015_s6 }
  0x56   : > { %p5018_p13 = pnand %p5016_p1, %p4900_p8 }
  0x57   : > { %p5025_p2 = por %p5024_p3, %p5023_p11 }
  0x58   : > { %p5019_p0 = pneg %p5018_p13 }
  0x5a   : > { %p5026_p6 = pnand %p5025_p2, %p5019_p0 }
  0x5c   : > { %5029 = shalt.err (!%p5026_p6)
}
  0x5d   : > { %4295 = dma.hbm_to_vmem [thread:$0]  (!%p5290_p7), %s5903_s2, 128, %s276_s16, [#allocation8]  }
  0x5e   : > { %s4212_s3 = sshll.u32 %s5176_s28, 6  ;;  %s325_s19 = scalar_lea.vmem [#allocation12], %s3820_s1 }
  0x5f   : > { %s331_s18 = scalar_lea.hbm %s5905_s4, %s4212_s3  ;;  %s333_s21 = sshll.u32 %s325_s19, 4  ;;  %s334_s21 = int_to_ptr.vmem [resolvable:$true] %s333_s21 }
  0x60   : > { %s5043_s10 = scalar_lea.vmem %s334_s21, 64  ;;  %p5924_p8 = pneg %p5336_p12 }
  0x61   : > { %p5044_p1 = scmp.ne.s32.totalorder %s334_s21, %s5043_s10  ;;  %s5192_s12 = smov [#allocation12]  }
  0x62   : > { %s5048_s11 = sshll.u32 %s5192_s12, 4  ;;  %s5049_s11 = int_to_ptr.vmem [resolvable:$false] %s5048_s11 }
  0x63   : > { %p5046_p11 = pnand %p5044_p1, %p5924_p8  ;;  %s5050_s6 = scalar_lea.vmem %s5049_s11, 128 }
  0x64   : > { %p5051_p10 = scmp.lt.s32.totalorder %s334_s21, %s5049_s11  ;;  %p5052_p7 = scmp.lt.s32.totalorder %s5050_s6, %s5043_s10 }
  0x65   : > { %p5047_p9 = pneg %p5046_p11 }
  0x66   : > { %p5053_p13 = por %p5052_p7, %p5051_p10 }
  0x68   : > { %p5054_p0 = pnand %p5053_p13, %p5047_p9 }
  0x6a   : > { %5057 = shalt.err (!%p5054_p0)
}
  0x6b   : > { %4305 = dma.hbm_to_vmem [thread:$0]  (!%p5336_p12), %s331_s18, 64, %s334_s21, %s5342_s13  }
  0x6c   : > { %s4257_s16 = smul.u32 768, %s5324_s15  ;;  %s5925_s19 = sand.u32 1, %s5180_s29  }
  0x6d   : > { %s4258_s1 = smul.u32 12288, %s5176_s28  ;;  %s341_s10 = scalar_lea.sflag [#allocation14], %s5925_s19 }
  0x6e   : > { %s344_s22 = scalar_lea.vmem [#allocation13], %s4257_s16  ;;  %p5926_p2 = pmov %p5924_p8 }
  0x6f   : > { %s353_s3 = scalar_lea.hbm %s5906_s5, %s4258_s1  ;;  %s354_s14 = sshll.u32 %s344_s22, 4  ;;  %s355_s14 = int_to_ptr.vmem [resolvable:$true] %s354_s14 }
  0x70   : > { %s5071_s12 = scalar_lea.vmem %s355_s14, 12288  ;;  %s5193_s11 = smov [#allocation13]  }
  0x71   : > { %p5072_p3 = scmp.ne.s32.totalorder %s355_s14, %s5071_s12  ;;  %s5076_s6 = sshll.u32 %s5193_s11, 4  ;;  %s5077_s6 = int_to_ptr.vmem [resolvable:$false] %s5076_s6 }
  0x72   : > { %s5078_s15 = scalar_lea.vmem %s5077_s6, 24576  ;;  %p5079_p8 = scmp.lt.s32.totalorder %s355_s14, %s5077_s6 }
  0x73   : > { %p5074_p6 = pnand %p5072_p3, %p5926_p2  ;;  %p5080_p11 = scmp.lt.s32.totalorder %s5078_s15, %s5071_s12 }
  0x75   : > { %p5075_p1 = pneg %p5074_p6  ;;  %p5081_p9 = por %p5080_p11, %p5079_p8 }
  0x77   : > { %p5082_p10 = pnand %p5081_p9, %p5075_p1 }
  0x79   : > { %5085 = shalt.err (!%p5082_p10)
}
  0x7a   : > { %s5194_s13 = smov 192   ;;  %s5195_s18 = smov 12  }
  0x7b   : > { %4308 = dma.hbm_to_vmem [thread:$0]  (!%p5336_p12), %s353_s3, 12288, %s355_s14, %s341_s10, %s5194_s13, %s5194_s13, %s5195_s18  }
  0x7c   : > { %366 = sbr.rel (%p5282_p5) target bundleno = 1106 (0x452), region = 48  ;;  %p5927_p7 = scmp.eq.s32.totalorder (!%p5282_p5), %s5270_s30, 0 }
  0x81   : > { %5135 = dma.done.wait (%p5927_p7), [#allocation5], 32   ;;  %p5928_p13 = pmov %p5927_p7 }
  0x82   : > { %p5929_p0 = pmov %p5927_p7 }
  0x83   : > { %5137 = vsyncadd (%p5928_p13), [#allocation5], 4294967264 }
  0x84   : > { %5139 = dma.done.wait (%p5929_p0), [#allocation8], 2176   ;;  %p5930_p3 = pmov %p5929_p0 }
  0x85   : > { %s380_s23 = sand.u32 1, %s5270_s30   ;;  %s382_s21 = sand.u32 1, %s5164_s25  }
  0x86   : > { %5141 = vsyncadd (%p5930_p3), [#allocation8], 4294965120  ;;  %s3830_s16 = sshll.u32 %s382_s21, 11  ;;  %s381_s9 = scalar_lea.sflag [#allocation11], %s380_s23 }
  0x87   : > { %s5403_s1 = scalar_lea.vmem [#allocation10], %s3830_s16 }
  0x88   : > { %5143 = dma.done.wait (%p5278_p4), %s381_s9, 32832  }
  0x89   : > { %5145 = vsyncadd (%p5278_p4), %s381_s9, 4294934464  ;;  %s3831_s24 = sshll.u32 %s382_s21, 2  ;;  %s4259_s20 = smul.u32 768, %s382_s21 }
  0x8a   : > { %s5409_s3 = scalar_lea.vmem [#allocation12], %s3831_s24  ;;  %s399_s22 = scalar_lea.sflag [#allocation14], %s380_s23 }
  0x8b   : > { %s5411_s14 = scalar_lea.vmem [#allocation13], %s4259_s20 }
  0x8c   : > { %5147 = dma.done.wait (%p5278_p4), %s399_s22, 12288  }
  0x8d   : > { %5149 = vsyncadd (%p5278_p4), %s399_s22, 4294955008  ;;  %p5931_p5 = pmov %p5929_p0 }
  0x8e   : > { %p5932_p12 = pmov %p5929_p0 }
  0x8f   : > { %5151 = dma.done.wait (%p5931_p5), [#allocation14], 48  }
  0x90   : > { %5153 = vsyncadd (%p5932_p12), [#allocation14], 4294967248  ;;  %p3833_p2 = scmp.ne.s32.totalorder %s5172_s27, 0 }
  0x92   : > { %452 = sbr.rel (%p3833_p2) target bundleno = 379 (0x17b), region = 80 }
  0x97   : > { %v463_v0 = vld [vmem:[#allocation7 + $0x40] sm:$0xff]  ;;  %v464_v2 = vld [vmem:[#allocation7 + $0x48] sm:$0xff]  ;;  %v5196_v8 = vmov 0   ;;  %v465_v15 = vld [vmem:[#allocation7 + $0x50] sm:$0xff]  ;;  %vm593_vm0 = vcmask 261120   ;;  %v5197_v35 = vmov 0.0   ;;  %v473_v36 = vlaneseq }
  0x98   : > { %v467_v1 = vld [vmem:[#allocation7 + $0x60] sm:$0xff]  ;;  %v468_v4 = vld [vmem:[#allocation7 + $0x68] sm:$0xff]  ;;  %629 = vmatprep.mubr.bf16.mxu0 %v5196_v8  ;;  %670 = vmatprep.mubr.bf16.mxu1 %v5196_v8  ;;  %v469_v16 = vld [vmem:[#allocation7 + $0x70] sm:$0xff]  ;;  %831 = vst [vmem:[#allocation3] sm:$0x3f] %v5197_v35 }
  0x99   : > { %v3843_v3 = vcombine.high %v463_v0, %v467_v1  ;;  %v3842_v5 = vcombine.low %v463_v0, %v467_v1  ;;  %v455_v6 = vld [vmem:[#allocation7] sm:$0xff]  ;;  %v3845_v9 = vcombine.high %v464_v2, %v468_v4  ;;  %v3844_v10 = vcombine.low %v464_v2, %v468_v4  ;;  %v456_v12 = vld [vmem:[#allocation7 + $0x8] sm:$0xff]  ;;  %v466_v17 = vld [vmem:[#allocation7 + $0x58] sm:$0xff] }
  0x9a   : > { %v459_v7 = vld [vmem:[#allocation7 + $0x20] sm:$0xff]  ;;  %v460_v13 = vld [vmem:[#allocation7 + $0x28] sm:$0xff]  ;;  %v453_v19 = vld [vmem:[#allocation4] sm:$0x3]  ;;  %v3847_v22 = vcombine.high %v465_v15, %v469_v16  ;;  %v3846_v29 = vcombine.low %v465_v15, %v469_v16  ;;  %v474_v37 = vshrl.u32 %v473_v36, 7 }
  0x9b   : > { %v3835_v11 = vcombine.high %v455_v6, %v459_v7  ;;  %609 = vmatprep.subr.bf16.mxu0 %v3843_v3  ;;  %v3837_v14 = vcombine.high %v456_v12, %v460_v13  ;;  %650 = vmatprep.subr.bf16.mxu1 %v3845_v9  ;;  %v3834_v18 = vcombine.low %v455_v6, %v459_v7  ;;  %v470_v20 = vld [vmem:[#allocation7 + $0x78] sm:$0xff]  ;;  %v457_v24 = vld [vmem:[#allocation7 + $0x10] sm:$0xff]  ;;  %v471_v39 = vld [vmem:[#allocation9] sm:$0xff]  ;;  %v5198_v45 = vmov 1983009808  }
  0x9c   : > { %610 = vmatpush1.bf16.msra.mxu0 %v3842_v5  ;;  %651 = vmatpush1.bf16.msra.mxu1 %v3844_v10  ;;  %v3836_v21 = vcombine.low %v456_v12, %v460_v13  ;;  %v3849_v23 = vcombine.high %v466_v17, %v470_v20  ;;  %v461_v25 = vld [vmem:[#allocation7 + $0x30] sm:$0xff]  ;;  %v454_v26 = vpack.c.bf16 %v453_v19, %v453_v19  ;;  %v458_v27 = vld [vmem:[#allocation7 + $0x18] sm:$0xff]  ;;  %v475_v38 = vsub.s32 0, %v474_v37 }
  0x9d   : > { %611 = vmatprep.subr.bf16.mxu0 %v3835_v11  ;;  %652 = vmatprep.subr.bf16.mxu1 %v3837_v14  ;;  %v462_v28 = vld [vmem:[#allocation7 + $0x38] sm:$0xff]  ;;  %v3848_v30 = vcombine.low %v466_v17, %v470_v20  ;;  %v3839_v31 = vcombine.high %v457_v24, %v461_v25  ;;  %v3838_v33 = vcombine.low %v457_v24, %v461_v25  ;;  %v483_v40 = vsub.s32 2, %v474_v37 }
  0x9e   : > { %v3841_v32 = vcombine.high %v458_v27, %v462_v28  ;;  %v3840_v34 = vcombine.low %v458_v27, %v462_v28  ;;  %v479_v41 = vsub.s32 1, %v474_v37  ;;  %v487_v42 = vsub.s32 3, %v474_v37 }
  0x9f   : > { %v476_v43 = vrot.slane %v471_v39, %v475_v38  ;;  %v484_v44 = vrot.slane %v471_v39, %v483_v40  ;;  %v796_v46 = vunpack.c.l.s4 %v5198_v45  ;;  %v491_v52 = vsub.s32 4, %v474_v37 }
  0xa0   : > { %612 = vmatpush1.bf16.msra.mxu0 %v3834_v18  ;;  %653 = vmatpush1.bf16.msra.mxu1 %v3836_v21  ;;  %v480_v47 = vrot.slane %v471_v39, %v479_v41  ;;  %v488_v49 = vrot.slane %v471_v39, %v487_v42  ;;  %v499_v56 = vsub.s32 6, %v474_v37  ;;  %v495_v60 = vsub.s32 5, %v474_v37 }
  0xa1   : > { %691 = vmatprep.subr.bf16.mxu0 %v3847_v22  ;;  %732 = vmatprep.subr.bf16.mxu1 %v3849_v23  ;;  %v797_v55 = vunpack.c.0.s8 %v796_v46  ;;  %v503_v0 = vsub.s32 7, %v474_v37  ;;  %v492_v3 = vrot.slane %v471_v39, %v491_v52 }
  0xa2   : > { %v500_v7 = vrot.slane %v471_v39, %v499_v56  ;;  %v496_v11 = vrot.slane %v471_v39, %v495_v60 }
  0xa3   : > { %3850 = vmatmul.mubr.msk.bf16.vlgmr.msra.gmra.mxu0 %vm593_vm0, %v454_v26  ;;  %3851 = vmatmul.mubr.msk.bf16.vlgmr.msra.gmra.mxu1 %vm593_vm0, %v454_v26  ;;  %v800_v4 = vsub.s32 %v797_v55, %v474_v37  ;;  %v504_v16 = vrot.slane %v471_v39, %v503_v0 }
  0xa4   : > { %692 = vmatpush1.bf16.msra.mxu0 %v3846_v29  ;;  %733 = vmatpush1.bf16.msra.mxu1 %v3848_v30 }
  0xa5   : > { %693 = vmatprep.subr.bf16.mxu0 %v3839_v31  ;;  %734 = vmatprep.subr.bf16.mxu1 %v3841_v32 }
  0xa6   : > { %711 = vmatprep.mubr.bf16.mxu0 %v5196_v8  ;;  %752 = vmatprep.mubr.bf16.mxu1 %v5196_v8 }
  0xa8   : > { %694 = vmatpush1.bf16.msra.mxu0 %v3838_v33  ;;  %735 = vmatpush1.bf16.msra.mxu1 %v3840_v34 }
  0xab   : > { %3852 = vmatmul.mubr.msk.bf16.vlgmr.msra.gmra.mxu0 %vm593_vm0, %v454_v26  ;;  %3853 = vmatmul.mubr.msk.bf16.vlgmr.msra.gmra.mxu1 %vm593_vm0, %v454_v26 }
 0x163   : > { %v631_v48 = vpop.f32.mrf.mxu0  ;;  %v672_v51 = vpop.f32.mrf.mxu1 }
 0x164   : > { %v632_v50 = vadd.f32 %v631_v48, %v476_v43  ;;  %v673_v53 = vadd.f32 %v672_v51, %v484_v44 }
 0x165   : > { %v633_v54 = vpop.f32.mrf.mxu0  ;;  %v674_v59 = vpop.f32.mrf.mxu1 }
 0x166   : > { %v769_v57 = vmul.f32 0.01, %v632_v50  ;;  %v634_v58 = vadd.f32 %v633_v54, %v480_v47  ;;  %vm761_vm1 = vcmp.gt.f32.partialorder %v632_v50, 0.0  ;;  %v771_v61 = vmul.f32 0.01, %v673_v53 }
 0x167   : > { %v675_v62 = vadd.f32 %v674_v59, %v488_v49  ;;  %v635_v63 = vpop.f32.mrf.mxu0  ;;  %vm763_vm2 = vcmp.gt.f32.partialorder %v673_v53, 0.0  ;;  %v676_v2 = vpop.f32.mrf.mxu1 }
 0x168   : > { %vm762_vm3 = vcmp.gt.f32.partialorder %v634_v58, 0.0  ;;  %v770_v1 = vmul.f32 0.01, %v634_v58  ;;  %v777_v8 = vsel %vm761_vm1, %v632_v50, %v769_v57  ;;  %v779_v12 = vsel %vm763_vm2, %v673_v53, %v771_v61 }
 0x169   : > { %vm764_vm4 = vcmp.gt.f32.partialorder %v675_v62, 0.0  ;;  %v772_v5 = vmul.f32 0.01, %v675_v62  ;;  %v636_v6 = vpop.f32.mrf.mxu0  ;;  %v677_v10 = vpop.f32.mrf.mxu1 }
 0x16a   : > { %v778_v9 = vsel %vm762_vm3, %v634_v58, %v770_v1 }
 0x16b   : > { %v793_v13 = vcombine.low %v777_v8, %v778_v9  ;;  %v780_v14 = vsel %vm764_vm4, %v675_v62, %v772_v5  ;;  %v713_v15 = vpop.f32.mrf.mxu0  ;;  %v754_v19 = vpop.f32.mrf.mxu1 }
 0x16c   : > { %v794_v17 = vcombine.low %v779_v12, %v780_v14  ;;  %v714_v18 = vadd.f32 %v713_v15, %v492_v3  ;;  %v755_v21 = vadd.f32 %v754_v19, %v500_v7 }
 0x16d   : > { %v801_v20 = vrot.slane %v793_v13, %v800_v4  ;;  %v715_v22 = vpop.f32.mrf.mxu0  ;;  %v756_v26 = vpop.f32.mrf.mxu1 }
 0x16e   : > { %v808_v23 = vrot.slane %v794_v17, %v800_v4  ;;  %v773_v24 = vmul.f32 0.01, %v714_v18  ;;  %v716_v25 = vadd.f32 %v715_v22, %v496_v11  ;;  %vm765_vm5 = vcmp.gt.f32.partialorder %v714_v18, 0.0 }
 0x16f   : > { %v775_v27 = vmul.f32 0.01, %v755_v21  ;;  %v757_v28 = vadd.f32 %v756_v26, %v504_v16  ;;  %v717_v29 = vpop.f32.mrf.mxu0  ;;  %vm767_vm6 = vcmp.gt.f32.partialorder %v755_v21, 0.0  ;;  %v758_v32 = vpop.f32.mrf.mxu1 }
 0x170   : > { %v809_v30 = vcombine.low %v801_v20, %v808_v23  ;;  %vm766_vm7 = vcmp.gt.f32.partialorder %v716_v25, 0.0  ;;  %v774_v31 = vmul.f32 0.01, %v716_v25  ;;  %v781_v35 = vsel %vm765_vm5, %v714_v18, %v773_v24 }
 0x171   : > { %vm768_vm8 = vcmp.gt.f32.partialorder %v757_v28, 0.0  ;;  %v776_v33 = vmul.f32 0.01, %v757_v28  ;;  %v718_v34 = vpop.f32.mrf.mxu0  ;;  %v759_v37 = vpop.f32.mrf.mxu1  ;;  %v783_v38 = vsel %vm767_vm6, %v755_v21, %v775_v27 }
 0x172   : > { %829 = vst [vmem:[#allocation2] sm:$0xff] %v809_v30  ;;  %v782_v36 = vsel %vm766_vm7, %v716_v25, %v774_v31 }
 0x173   : > { %v810_v39 = vcombine.low %v781_v35, %v782_v36  ;;  %v784_v40 = vsel %vm768_vm8, %v757_v28, %v776_v33 }
 0x174   : > { %v811_v41 = vcombine.low %v783_v38, %v784_v40 }
 0x175   : > { %v818_v42 = vrot.slane %v810_v39, %v800_v4 }
 0x176   : > { %v825_v43 = vrot.slane %v811_v41, %v800_v4 }
 0x178   : > { %v826_v44 = vcombine.low %v818_v42, %v825_v43 }
 0x17a   : > { %830 = vst [vmem:[#allocation2 + $0x8] sm:$0xff] %v826_v44 }
 0x17b PF: > { %v4384_v45 = vld [vmem:[%s5403_s1 + $0xe4] ss:$16 sps:$4 sm:$0xff]   ;;  %v4388_v47 = vld [vmem:[%s5403_s1 + $0xe0] ss:$16 sps:$4 sm:$0xff]   ;;  %v5199_v17 = vmov 1983009808   ;;  %v840_v19 = vlaneseq }
 0x17c   : > { %v4386_v46 = vld [vmem:[%s5403_s1 + $0x2e4] ss:$16 sps:$4 sm:$0xff]   ;;  %2444 = vmatprep.subr.bf16.mxu0 %v4384_v45  ;;  %v4389_v48 = vld [vmem:[%s5403_s1 + $0x2e0] ss:$16 sps:$4 sm:$0xff]   ;;  %v838_v18 = vunpack.c.l.s4 %v5199_v17  ;;  %p4206_p4 = scmp.ne.s32.totalorder %s5172_s27, 3 }
 0x17d   : > { %2485 = vmatprep.subr.bf16.mxu1 %v4386_v46  ;;  %v4390_v49 = vld [vmem:[%s5403_s1 + $0xc4] ss:$16 sps:$4 sm:$0xff]   ;;  %2445 = vmatpush1.bf16.msra.mxu0 %v4388_v47  ;;  %v4394_v51 = vld [vmem:[%s5403_s1 + $0xc0] ss:$16 sps:$4 sm:$0xff]   ;;  %v5465_v24 = vshrl.u32 %v840_v19, 7 }
 0x17e   : > { %2486 = vmatpush1.bf16.msra.mxu1 %v4389_v48  ;;  %v4392_v50 = vld [vmem:[%s5403_s1 + $0x2c4] ss:$16 sps:$4 sm:$0xff]   ;;  %2446 = vmatprep.subr.bf16.mxu0 %v4390_v49  ;;  %v4395_v52 = vld [vmem:[%s5403_s1 + $0x2c0] ss:$16 sps:$4 sm:$0xff]   ;;  %v839_v23 = vunpack.c.0.s8 %v838_v18 }
 0x17f   : > { %2487 = vmatprep.subr.bf16.mxu1 %v4392_v50  ;;  %v4396_v53 = vld [vmem:[%s5403_s1 + $0xa4] ss:$16 sps:$4 sm:$0xff]   ;;  %v4400_v55 = vld [vmem:[%s5403_s1 + $0xa0] ss:$16 sps:$4 sm:$0xff]  }
 0x180   : > { %v4398_v54 = vld [vmem:[%s5403_s1 + $0x2a4] ss:$16 sps:$4 sm:$0xff]   ;;  %v4401_v56 = vld [vmem:[%s5403_s1 + $0x2a0] ss:$16 sps:$4 sm:$0xff]   ;;  %v5473_v30 = vsub.s32 %v839_v23, %v5465_v24 }
 0x181   : > { %2447 = vmatpush1.bf16.msra.mxu0 %v4394_v51  ;;  %v4402_v57 = vld [vmem:[%s5403_s1 + $0x84] ss:$16 sps:$4 sm:$0xff]   ;;  %v4406_v59 = vld [vmem:[%s5403_s1 + $0x80] ss:$16 sps:$4 sm:$0xff]   ;;  %v833_v23 = vld [vmem:[#allocation2 + $0x8] sm:$0xff] }
 0x182   : > { %2488 = vmatpush1.bf16.msra.mxu1 %v4395_v52  ;;  %2448 = vmatprep.subr.bf16.mxu0 %v4396_v53  ;;  %v4404_v58 = vld [vmem:[%s5403_s1 + $0x284] ss:$16 sps:$4 sm:$0xff]   ;;  %v4407_v60 = vld [vmem:[%s5403_s1 + $0x280] ss:$16 sps:$4 sm:$0xff]  }
 0x183   : > { %2489 = vmatprep.subr.bf16.mxu1 %v4398_v54  ;;  %v4408_v61 = vld [vmem:[%s5403_s1 + $0x64] ss:$16 sps:$4 sm:$0xff]   ;;  %v4412_v63 = vld [vmem:[%s5403_s1 + $0x60] ss:$16 sps:$4 sm:$0xff]  }
 0x184   : > { %v4410_v62 = vld [vmem:[%s5403_s1 + $0x264] ss:$16 sps:$4 sm:$0xff]   ;;  %v4413_v0 = vld [vmem:[%s5403_s1 + $0x260] ss:$16 sps:$4 sm:$0xff]  }
 0x185   : > { %2449 = vmatpush1.bf16.msra.mxu0 %v4400_v55  ;;  %v4414_v1 = vld [vmem:[%s5403_s1 + $0x44] ss:$16 sps:$4 sm:$0xff]   ;;  %v4418_v3 = vld [vmem:[%s5403_s1 + $0x40] ss:$16 sps:$4 sm:$0xff]  }
 0x186   : > { %2490 = vmatpush1.bf16.msra.mxu1 %v4401_v56  ;;  %2450 = vmatprep.subr.bf16.mxu0 %v4402_v57  ;;  %v4416_v2 = vld [vmem:[%s5403_s1 + $0x244] ss:$16 sps:$4 sm:$0xff]   ;;  %v4419_v4 = vld [vmem:[%s5403_s1 + $0x240] ss:$16 sps:$4 sm:$0xff]  }
 0x187   : > { %2491 = vmatprep.subr.bf16.mxu1 %v4404_v58  ;;  %v4420_v5 = vld [vmem:[%s5403_s1 + $0x24] ss:$16 sps:$4 sm:$0xff]   ;;  %v4424_v7 = vld [vmem:[%s5403_s1 + $0x20] ss:$16 sps:$4 sm:$0xff]  }
 0x188   : > { %v4422_v6 = vld [vmem:[%s5403_s1 + $0x224] ss:$16 sps:$4 sm:$0xff]   ;;  %v4425_v8 = vld [vmem:[%s5403_s1 + $0x220] ss:$16 sps:$4 sm:$0xff]  }
 0x189   : > { %2451 = vmatpush1.bf16.msra.mxu0 %v4406_v59  ;;  %v4426_v9 = vld [vmem:[%s5403_s1 + $0x4] ss:$16 sps:$4 sm:$0xff]   ;;  %v4430_v11 = vld [vmem:[%s5403_s1] ss:$16 sps:$4 sm:$0xff]  }
 0x18a   : > { %2492 = vmatpush1.bf16.msra.mxu1 %v4407_v60  ;;  %2452 = vmatprep.subr.bf16.mxu0 %v4408_v61  ;;  %v4428_v10 = vld [vmem:[%s5403_s1 + $0x204] ss:$16 sps:$4 sm:$0xff]   ;;  %v4431_v12 = vld [vmem:[%s5403_s1 + $0x200] ss:$16 sps:$4 sm:$0xff]  }
 0x18b   : > { %2493 = vmatprep.subr.bf16.mxu1 %v4410_v62  ;;  %v4432_v13 = vld [vmem:[%s5403_s1 + $0x1e4] ss:$16 sps:$4 sm:$0xff]   ;;  %v4436_v15 = vld [vmem:[%s5403_s1 + $0x1e0] ss:$16 sps:$4 sm:$0xff]  }
 0x18c   : > { %v4434_v14 = vld [vmem:[%s5403_s1 + $0x3e4] ss:$16 sps:$4 sm:$0xff]   ;;  %v4437_v16 = vld [vmem:[%s5403_s1 + $0x3e0] ss:$16 sps:$4 sm:$0xff]  }
 0x18d   : > { %2453 = vmatpush1.bf16.msra.mxu0 %v4412_v63  ;;  %v4438_v20 = vld [vmem:[%s5403_s1 + $0x1c4] ss:$16 sps:$4 sm:$0xff]   ;;  %v4442_v22 = vld [vmem:[%s5403_s1 + $0x1c0] ss:$16 sps:$4 sm:$0xff]  }
 0x18e   : > { %2494 = vmatpush1.bf16.msra.mxu1 %v4413_v0  ;;  %2454 = vmatprep.subr.bf16.mxu0 %v4414_v1  ;;  %v4440_v21 = vld [vmem:[%s5403_s1 + $0x3c4] ss:$16 sps:$4 sm:$0xff]   ;;  %v4443_v25 = vld [vmem:[%s5403_s1 + $0x3c0] ss:$16 sps:$4 sm:$0xff]  }
 0x18f   : > { %2495 = vmatprep.subr.bf16.mxu1 %v4416_v2  ;;  %v4444_v26 = vld [vmem:[%s5403_s1 + $0x1a4] ss:$16 sps:$4 sm:$0xff]   ;;  %v4448_v28 = vld [vmem:[%s5403_s1 + $0x1a0] ss:$16 sps:$4 sm:$0xff]  }
 0x190   : > { %v4446_v27 = vld [vmem:[%s5403_s1 + $0x3a4] ss:$16 sps:$4 sm:$0xff]   ;;  %v4449_v29 = vld [vmem:[%s5403_s1 + $0x3a0] ss:$16 sps:$4 sm:$0xff]  }
 0x191   : > { %2455 = vmatpush1.bf16.msra.mxu0 %v4418_v3  ;;  %v4450_v31 = vld [vmem:[%s5403_s1 + $0x184] ss:$16 sps:$4 sm:$0xff]   ;;  %v4454_v34 = vld [vmem:[%s5403_s1 + $0x180] ss:$16 sps:$4 sm:$0xff]  }
 0x192   : > { %2496 = vmatpush1.bf16.msra.mxu1 %v4419_v4  ;;  %2456 = vmatprep.subr.bf16.mxu0 %v4420_v5  ;;  %v4452_v32 = vld [vmem:[%s5403_s1 + $0x384] ss:$16 sps:$4 sm:$0xff]   ;;  %v4455_v37 = vld [vmem:[%s5403_s1 + $0x380] ss:$16 sps:$4 sm:$0xff]  }
 0x193   : > { %2497 = vmatprep.subr.bf16.mxu1 %v4422_v6  ;;  %v832_v33 = vld [vmem:[#allocation2] sm:$0xff] }
 0x194   : > { %v843_v35 = vrot.slane %v832_v33, %v5473_v30  ;;  %v836_v36 = vcombine.high %v832_v33, %v832_v33  ;;  %v4456_v38 = vld [vmem:[%s5403_s1 + $0x164] ss:$16 sps:$4 sm:$0xff]   ;;  %v4460_v42 = vld [vmem:[%s5403_s1 + $0x160] ss:$16 sps:$4 sm:$0xff]  }
 0x195   : > { %2457 = vmatpush1.bf16.msra.mxu0 %v4424_v7  ;;  %v4458_v39 = vld [vmem:[%s5403_s1 + $0x364] ss:$16 sps:$4 sm:$0xff]   ;;  %v4461_v45 = vld [vmem:[%s5403_s1 + $0x360] ss:$16 sps:$4 sm:$0xff]  }
 0x196   : > { %2498 = vmatpush1.bf16.msra.mxu1 %v4425_v8  ;;  %2458 = vmatprep.subr.bf16.mxu0 %v4426_v9  ;;  %v851_v40 = vcombine.high %v843_v35, %v843_v35  ;;  %v850_v41 = vrot.slane %v836_v36, %v5473_v30  ;;  %v4462_v46 = vld [vmem:[%s5403_s1 + $0x144] ss:$16 sps:$4 sm:$0xff]   ;;  %v4466_v49 = vld [vmem:[%s5403_s1 + $0x140] ss:$16 sps:$4 sm:$0xff]   ;;  %v5505_v61 = vpack.c.bf16 %v843_v35, %v843_v35 }
 0x197   : > { %2499 = vmatprep.subr.bf16.mxu1 %v4428_v10  ;;  %v4464_v47 = vld [vmem:[%s5403_s1 + $0x344] ss:$16 sps:$4 sm:$0xff]   ;;  %v4467_v50 = vld [vmem:[%s5403_s1 + $0x340] ss:$16 sps:$4 sm:$0xff]  }
 0x198   : > { %v5484_v43 = vpack.c.bf16 %v851_v40, %v851_v40  ;;  %v852_v44 = vcombine.high %v850_v41, %v850_v41  ;;  %v4468_v51 = vld [vmem:[%s5403_s1 + $0x124] ss:$16 sps:$4 sm:$0xff]   ;;  %v4472_v53 = vld [vmem:[%s5403_s1 + $0x120] ss:$16 sps:$4 sm:$0xff]   ;;  %v5507_v62 = vpack.c.bf16 %v850_v41, %v850_v41 }
 0x199   : > { %2459 = vmatpush1.bf16.msra.mxu0 %v4430_v11  ;;  %v4470_v52 = vld [vmem:[%s5403_s1 + $0x324] ss:$16 sps:$4 sm:$0xff]   ;;  %v4473_v54 = vld [vmem:[%s5403_s1 + $0x320] ss:$16 sps:$4 sm:$0xff]  }
 0x19a   : > { %2500 = vmatpush1.bf16.msra.mxu1 %v4431_v12  ;;  %2460 = vmatprep.subr.bf16.mxu0 %v4432_v13  ;;  %v5489_v48 = vpack.c.bf16 %v852_v44, %v852_v44  ;;  %v4474_v55 = vld [vmem:[%s5403_s1 + $0x104] ss:$16 sps:$4 sm:$0xff]   ;;  %v4478_v57 = vld [vmem:[%s5403_s1 + $0x100] ss:$16 sps:$4 sm:$0xff]  }
 0x19b   : > { %2501 = vmatprep.subr.bf16.mxu1 %v4434_v14  ;;  %2476 = vmatprep.mubr.bf16.mxu0 %v5484_v43  ;;  %v4476_v56 = vld [vmem:[%s5403_s1 + $0x304] ss:$16 sps:$4 sm:$0xff]   ;;  %v4479_v58 = vld [vmem:[%s5403_s1 + $0x300] ss:$16 sps:$4 sm:$0xff]  }
 0x19c   : > { %2517 = vmatprep.mubr.bf16.mxu1 %v5489_v48  ;;  %v4483_v59 = vld [vmem:[%s5403_s1 + $0x4e4] ss:$16 sps:$4 sm:$0xff]   ;;  %v4481_v63 = vld [vmem:[%s5403_s1 + $0x4e0] ss:$16 sps:$4 sm:$0xff]  }
 0x19d   : > { %2461 = vmatpush2.bf16.msra.mxu0 %v4436_v15  ;;  %v4486_v60 = vld [vmem:[%s5403_s1 + $0x6e4] ss:$16 sps:$4 sm:$0xff]   ;;  %v4484_v0 = vld [vmem:[%s5403_s1 + $0x6e0] ss:$16 sps:$4 sm:$0xff]  }
 0x19e   : > { %2502 = vmatpush2.bf16.msra.mxu1 %v4437_v16  ;;  %2462 = vmatprep.subr.bf16.mxu0 %v4438_v20  ;;  %v4489_v1 = vld [vmem:[%s5403_s1 + $0x4c4] ss:$16 sps:$4 sm:$0xff]   ;;  %v4487_v3 = vld [vmem:[%s5403_s1 + $0x4c0] ss:$16 sps:$4 sm:$0xff]  }
 0x19f   : > { %2503 = vmatprep.subr.bf16.mxu1 %v4440_v21  ;;  %v4492_v2 = vld [vmem:[%s5403_s1 + $0x6c4] ss:$16 sps:$4 sm:$0xff]   ;;  %v4490_v4 = vld [vmem:[%s5403_s1 + $0x6c0] ss:$16 sps:$4 sm:$0xff]  }
 0x1a0   : > { %v4495_v5 = vld [vmem:[%s5403_s1 + $0x4a4] ss:$16 sps:$4 sm:$0xff]   ;;  %v4493_v7 = vld [vmem:[%s5403_s1 + $0x4a0] ss:$16 sps:$4 sm:$0xff]  }
 0x1a1   : > { %2463 = vmatpush2.bf16.msra.mxu0 %v4442_v22  ;;  %v4498_v6 = vld [vmem:[%s5403_s1 + $0x6a4] ss:$16 sps:$4 sm:$0xff]   ;;  %v4496_v8 = vld [vmem:[%s5403_s1 + $0x6a0] ss:$16 sps:$4 sm:$0xff]  }
 0x1a2   : > { %2504 = vmatpush2.bf16.msra.mxu1 %v4443_v25  ;;  %2464 = vmatprep.subr.bf16.mxu0 %v4444_v26  ;;  %v4501_v9 = vld [vmem:[%s5403_s1 + $0x484] ss:$16 sps:$4 sm:$0xff]   ;;  %v4499_v11 = vld [vmem:[%s5403_s1 + $0x480] ss:$16 sps:$4 sm:$0xff]   ;;  %v5536_v25 = vrot.slane %v833_v23, %v5473_v30  ;;  %v853_v26 = vcombine.high %v833_v23, %v833_v23  ;;  %v4590_v23 = vld [vmem:[%s5403_s1 + $0xa8] ss:$16 sps:$4 sm:$0xff]  }
 0x1a3   : > { %2505 = vmatprep.subr.bf16.mxu1 %v4446_v27  ;;  %v4504_v10 = vld [vmem:[%s5403_s1 + $0x684] ss:$16 sps:$4 sm:$0xff]   ;;  %v4502_v12 = vld [vmem:[%s5403_s1 + $0x680] ss:$16 sps:$4 sm:$0xff]  }
 0x1a4   : > { %v4507_v13 = vld [vmem:[%s5403_s1 + $0x464] ss:$16 sps:$4 sm:$0xff]   ;;  %v4505_v15 = vld [vmem:[%s5403_s1 + $0x460] ss:$16 sps:$4 sm:$0xff]  }
 0x1a5   : > { %2465 = vmatpush2.bf16.msra.mxu0 %v4448_v28  ;;  %v4510_v14 = vld [vmem:[%s5403_s1 + $0x664] ss:$16 sps:$4 sm:$0xff]   ;;  %v4508_v16 = vld [vmem:[%s5403_s1 + $0x660] ss:$16 sps:$4 sm:$0xff]  }
 0x1a6   : > { %2506 = vmatpush2.bf16.msra.mxu1 %v4449_v29  ;;  %2466 = vmatprep.subr.bf16.mxu0 %v4450_v31  ;;  %v4513_v17 = vld [vmem:[%s5403_s1 + $0x444] ss:$16 sps:$4 sm:$0xff]   ;;  %v4511_v19 = vld [vmem:[%s5403_s1 + $0x440] ss:$16 sps:$4 sm:$0xff]   ;;  %v868_v29 = vcombine.high %v5536_v25, %v5536_v25  ;;  %v5543_v31 = vrot.slane %v853_v26, %v5473_v30  ;;  %v4598_v26 = vld [vmem:[%s5403_s1 + $0x8c] ss:$16 sps:$4 sm:$0xff]  }
 0x1a7   : > { %2507 = vmatprep.subr.bf16.mxu1 %v4452_v32  ;;  %v4516_v18 = vld [vmem:[%s5403_s1 + $0x644] ss:$16 sps:$4 sm:$0xff]   ;;  %v4514_v20 = vld [vmem:[%s5403_s1 + $0x640] ss:$16 sps:$4 sm:$0xff]  }
 0x1a8   : > { %v4519_v21 = vld [vmem:[%s5403_s1 + $0x424] ss:$16 sps:$4 sm:$0xff]   ;;  %v4517_v27 = vld [vmem:[%s5403_s1 + $0x420] ss:$16 sps:$4 sm:$0xff]   ;;  %v869_v35 = vcombine.high %v5543_v31, %v5543_v31 }
 0x1a9   : > { %2467 = vmatpush2.bf16.msra.mxu0 %v4454_v34  ;;  %v4522_v22 = vld [vmem:[%s5403_s1 + $0x624] ss:$16 sps:$4 sm:$0xff]   ;;  %v4520_v28 = vld [vmem:[%s5403_s1 + $0x620] ss:$16 sps:$4 sm:$0xff]   ;;  %v5547_v34 = vpack.c.bf16 %v868_v29, %v868_v29  ;;  %v4607_v29 = vld [vmem:[%s5403_s1 + $0x26c] ss:$16 sps:$4 sm:$0xff]  }
 0x1aa   : > { %2508 = vmatpush2.bf16.msra.mxu1 %v4455_v37  ;;  %2468 = vmatprep.subr.bf16.mxu0 %v4456_v38  ;;  %v4525_v32 = vld [vmem:[%s5403_s1 + $0x404] ss:$16 sps:$4 sm:$0xff]   ;;  %v4523_v36 = vld [vmem:[%s5403_s1 + $0x400] ss:$16 sps:$4 sm:$0xff]   ;;  %v5553_v38 = vpack.c.bf16 %v869_v35, %v869_v35  ;;  %v4613_v35 = vld [vmem:[%s5403_s1 + $0x24c] ss:$16 sps:$4 sm:$0xff]  }
 0x1ab   : > { %2509 = vmatprep.subr.bf16.mxu1 %v4458_v39  ;;  %v4528_v33 = vld [vmem:[%s5403_s1 + $0x604] ss:$16 sps:$4 sm:$0xff]   ;;  %v4526_v37 = vld [vmem:[%s5403_s1 + $0x600] ss:$16 sps:$4 sm:$0xff]  }
 0x1ac   : > { %v4531_v39 = vld [vmem:[%s5403_s1 + $0x5e4] ss:$16 sps:$4 sm:$0xff]   ;;  %v4529_v41 = vld [vmem:[%s5403_s1 + $0x5e0] ss:$16 sps:$4 sm:$0xff]  }
 0x1ad   : > { %2469 = vmatpush2.bf16.msra.mxu0 %v4460_v42  ;;  %v4534_v40 = vld [vmem:[%s5403_s1 + $0x7e4] ss:$16 sps:$4 sm:$0xff]   ;;  %v4532_v42 = vld [vmem:[%s5403_s1 + $0x7e0] ss:$16 sps:$4 sm:$0xff]  }
 0x1ae   : > { %2510 = vmatpush2.bf16.msra.mxu1 %v4461_v45  ;;  %2470 = vmatprep.subr.bf16.mxu0 %v4462_v46  ;;  %v4537_v44 = vld [vmem:[%s5403_s1 + $0x5c4] ss:$16 sps:$4 sm:$0xff]   ;;  %v4535_v46 = vld [vmem:[%s5403_s1 + $0x5c0] ss:$16 sps:$4 sm:$0xff]  }
 0x1af   : > { %2511 = vmatprep.subr.bf16.mxu1 %v4464_v47  ;;  %v4540_v45 = vld [vmem:[%s5403_s1 + $0x7c4] ss:$16 sps:$4 sm:$0xff]   ;;  %v4538_v47 = vld [vmem:[%s5403_s1 + $0x7c0] ss:$16 sps:$4 sm:$0xff]  }
 0x1b1   : > { %2471 = vmatpush2.bf16.msra.mxu0 %v4466_v49  ;;  %v4543_v49 = vld [vmem:[%s5403_s1 + $0x5a4] ss:$16 sps:$4 sm:$0xff]  }
 0x1b2   : > { %2512 = vmatpush2.bf16.msra.mxu1 %v4467_v50  ;;  %2472 = vmatprep.subr.bf16.mxu0 %v4468_v51  ;;  %v4546_v50 = vld [vmem:[%s5403_s1 + $0x7a4] ss:$16 sps:$4 sm:$0xff]   ;;  %v4541_v51 = vld [vmem:[%s5403_s1 + $0x5a0] ss:$16 sps:$4 sm:$0xff]  }
 0x1b3   : > { %2513 = vmatprep.subr.bf16.mxu1 %v4470_v52  ;;  %v4544_v52 = vld [vmem:[%s5403_s1 + $0x7a0] ss:$16 sps:$4 sm:$0xff]  }
 0x1b5   : > { %2473 = vmatpush2.bf16.msra.mxu0 %v4472_v53  ;;  %v4549_v53 = vld [vmem:[%s5403_s1 + $0x584] ss:$16 sps:$4 sm:$0xff]  }
 0x1b6   : > { %2514 = vmatpush2.bf16.msra.mxu1 %v4473_v54  ;;  %2474 = vmatprep.subr.bf16.mxu0 %v4474_v55  ;;  %v4552_v54 = vld [vmem:[%s5403_s1 + $0x784] ss:$16 sps:$4 sm:$0xff]   ;;  %v4547_v55 = vld [vmem:[%s5403_s1 + $0x580] ss:$16 sps:$4 sm:$0xff]  }
 0x1b7   : > { %2515 = vmatprep.subr.bf16.mxu1 %v4476_v56  ;;  %v4550_v56 = vld [vmem:[%s5403_s1 + $0x780] ss:$16 sps:$4 sm:$0xff]  }
 0x1b9   : > { %2475 = vmatpush2.bf16.msra.mxu0 %v4478_v57  ;;  %v4555_v57 = vld [vmem:[%s5403_s1 + $0x564] ss:$16 sps:$4 sm:$0xff]  }
 0x1ba   : > { %2516 = vmatpush2.bf16.msra.mxu1 %v4479_v58  ;;  %2526 = vmatprep.subr.bf16.mxu0 %v4483_v59  ;;  %v4558_v58 = vld [vmem:[%s5403_s1 + $0x764] ss:$16 sps:$4 sm:$0xff]   ;;  %v4553_v59 = vld [vmem:[%s5403_s1 + $0x560] ss:$16 sps:$4 sm:$0xff]  }
 0x1bb   : > { %2567 = vmatprep.subr.bf16.mxu1 %v4486_v60  ;;  %v4556_v60 = vld [vmem:[%s5403_s1 + $0x760] ss:$16 sps:$4 sm:$0xff]  }
 0x1bc   : > { %2477 = vmatmul.mubr.bf16.vlgmr.msra.gmra.mxu0 %v5505_v61 }
 0x1bd   : > { %2518 = vmatmul.mubr.bf16.vlgmr.msra.gmra.mxu1 %v5507_v62  ;;  %2527 = vmatpush1.bf16.msra.mxu0 %v4481_v63  ;;  %v4561_v63 = vld [vmem:[%s5403_s1 + $0x544] ss:$16 sps:$4 sm:$0xff]  }
 0x1be   : > { %2568 = vmatpush1.bf16.msra.mxu1 %v4484_v0  ;;  %2528 = vmatprep.subr.bf16.mxu0 %v4489_v1  ;;  %v4564_v0 = vld [vmem:[%s5403_s1 + $0x744] ss:$16 sps:$4 sm:$0xff]   ;;  %v4559_v1 = vld [vmem:[%s5403_s1 + $0x540] ss:$16 sps:$4 sm:$0xff]  }
 0x1bf   : > { %2569 = vmatprep.subr.bf16.mxu1 %v4492_v2  ;;  %2558 = vmatprep.mubr.bf16.mxu0 %v5547_v34  ;;  %v4562_v2 = vld [vmem:[%s5403_s1 + $0x740] ss:$16 sps:$4 sm:$0xff]  }
 0x1c0   : > { %2599 = vmatprep.mubr.bf16.mxu1 %v5553_v38 }
 0x1c1   : > { %2529 = vmatpush1.bf16.msra.mxu0 %v4487_v3  ;;  %v4567_v3 = vld [vmem:[%s5403_s1 + $0x524] ss:$16 sps:$4 sm:$0xff]  }
 0x1c2   : > { %2570 = vmatpush1.bf16.msra.mxu1 %v4490_v4  ;;  %2530 = vmatprep.subr.bf16.mxu0 %v4495_v5  ;;  %v4570_v4 = vld [vmem:[%s5403_s1 + $0x724] ss:$16 sps:$4 sm:$0xff]   ;;  %v4565_v5 = vld [vmem:[%s5403_s1 + $0x520] ss:$16 sps:$4 sm:$0xff]  }
 0x1c3   : > { %2571 = vmatprep.subr.bf16.mxu1 %v4498_v6  ;;  %v4568_v6 = vld [vmem:[%s5403_s1 + $0x720] ss:$16 sps:$4 sm:$0xff]  }
 0x1c5   : > { %2531 = vmatpush1.bf16.msra.mxu0 %v4493_v7  ;;  %v4573_v7 = vld [vmem:[%s5403_s1 + $0x504] ss:$16 sps:$4 sm:$0xff]  }
 0x1c6   : > { %2572 = vmatpush1.bf16.msra.mxu1 %v4496_v8  ;;  %2532 = vmatprep.subr.bf16.mxu0 %v4501_v9  ;;  %v4576_v8 = vld [vmem:[%s5403_s1 + $0x704] ss:$16 sps:$4 sm:$0xff]   ;;  %v4571_v9 = vld [vmem:[%s5403_s1 + $0x500] ss:$16 sps:$4 sm:$0xff]  }
 0x1c7   : > { %2573 = vmatprep.subr.bf16.mxu1 %v4504_v10  ;;  %v4574_v10 = vld [vmem:[%s5403_s1 + $0x700] ss:$16 sps:$4 sm:$0xff]  }
 0x1c9   : > { %2533 = vmatpush1.bf16.msra.mxu0 %v4499_v11  ;;  %v4580_v11 = vld [vmem:[%s5403_s1 + $0xec] ss:$16 sps:$4 sm:$0xff]  }
 0x1ca   : > { %2574 = vmatpush1.bf16.msra.mxu1 %v4502_v12  ;;  %2534 = vmatprep.subr.bf16.mxu0 %v4507_v13  ;;  %v4583_v12 = vld [vmem:[%s5403_s1 + $0x2ec] ss:$16 sps:$4 sm:$0xff]   ;;  %v5593_v13 = vpack.c.bf16 %v5536_v25, %v5536_v25  ;;  %v4593_v25 = vld [vmem:[%s5403_s1 + $0x2a8] ss:$16 sps:$4 sm:$0xff]  }
 0x1cb   : > { %2575 = vmatprep.subr.bf16.mxu1 %v4510_v14  ;;  %v5597_v14 = vpack.c.bf16 %v5543_v31, %v5543_v31  ;;  %v4602_v31 = vld [vmem:[%s5403_s1 + $0x68] ss:$16 sps:$4 sm:$0xff]  }
 0x1cd   : > { %2535 = vmatpush1.bf16.msra.mxu0 %v4505_v15  ;;  %v4578_v15 = vld [vmem:[%s5403_s1 + $0xe8] ss:$16 sps:$4 sm:$0xff]  }
 0x1ce   : > { %2576 = vmatpush1.bf16.msra.mxu1 %v4508_v16  ;;  %2536 = vmatprep.subr.bf16.mxu0 %v4513_v17  ;;  %v4581_v16 = vld [vmem:[%s5403_s1 + $0x2e8] ss:$16 sps:$4 sm:$0xff]   ;;  %v4586_v17 = vld [vmem:[%s5403_s1 + $0xcc] ss:$16 sps:$4 sm:$0xff]  }
 0x1cf   : > { %2577 = vmatprep.subr.bf16.mxu1 %v4516_v18  ;;  %v4589_v18 = vld [vmem:[%s5403_s1 + $0x2cc] ss:$16 sps:$4 sm:$0xff]  }
 0x1d1   : > { %2537 = vmatpush1.bf16.msra.mxu0 %v4511_v19  ;;  %v4584_v19 = vld [vmem:[%s5403_s1 + $0xc8] ss:$16 sps:$4 sm:$0xff]  }
 0x1d2   : > { %2578 = vmatpush1.bf16.msra.mxu1 %v4514_v20  ;;  %2538 = vmatprep.subr.bf16.mxu0 %v4519_v21  ;;  %v4587_v20 = vld [vmem:[%s5403_s1 + $0x2c8] ss:$16 sps:$4 sm:$0xff]   ;;  %v4592_v21 = vld [vmem:[%s5403_s1 + $0xac] ss:$16 sps:$4 sm:$0xff]  }
 0x1d3   : > { %2579 = vmatprep.subr.bf16.mxu1 %v4522_v22  ;;  %v4595_v22 = vld [vmem:[%s5403_s1 + $0x2ac] ss:$16 sps:$4 sm:$0xff]  }
 0x1d5   : > { %2539 = vmatpush1.bf16.msra.mxu0 %v4517_v27  ;;  %v4601_v27 = vld [vmem:[%s5403_s1 + $0x28c] ss:$16 sps:$4 sm:$0xff]  }
 0x1d6   : > { %2580 = vmatpush1.bf16.msra.mxu1 %v4520_v28  ;;  %2540 = vmatprep.subr.bf16.mxu0 %v4525_v32  ;;  %v4596_v28 = vld [vmem:[%s5403_s1 + $0x88] ss:$16 sps:$4 sm:$0xff]  }
 0x1d7   : > { %2581 = vmatprep.subr.bf16.mxu1 %v4528_v33  ;;  %v4605_v32 = vld [vmem:[%s5403_s1 + $0x268] ss:$16 sps:$4 sm:$0xff]   ;;  %v4610_v33 = vld [vmem:[%s5403_s1 + $0x4c] ss:$16 sps:$4 sm:$0xff]  }
 0x1d9   : > { %2541 = vmatpush1.bf16.msra.mxu0 %v4523_v36  ;;  %v4608_v36 = vld [vmem:[%s5403_s1 + $0x48] ss:$16 sps:$4 sm:$0xff]  }
 0x1da   : > { %2582 = vmatpush1.bf16.msra.mxu1 %v4526_v37  ;;  %2542 = vmatprep.subr.bf16.mxu0 %v4531_v39  ;;  %v4611_v37 = vld [vmem:[%s5403_s1 + $0x248] ss:$16 sps:$4 sm:$0xff]   ;;  %v4616_v39 = vld [vmem:[%s5403_s1 + $0x2c] ss:$16 sps:$4 sm:$0xff]  }
 0x1db   : > { %2583 = vmatprep.subr.bf16.mxu1 %v4534_v40  ;;  %v4619_v40 = vld [vmem:[%s5403_s1 + $0x22c] ss:$16 sps:$4 sm:$0xff]  }
 0x1dd   : > { %2543 = vmatpush2.bf16.msra.mxu0 %v4529_v41  ;;  %v4614_v41 = vld [vmem:[%s5403_s1 + $0x28] ss:$16 sps:$4 sm:$0xff]  }
 0x1de   : > { %2584 = vmatpush2.bf16.msra.mxu1 %v4532_v42  ;;  %2544 = vmatprep.subr.bf16.mxu0 %v4537_v44  ;;  %v4617_v42 = vld [vmem:[%s5403_s1 + $0x228] ss:$16 sps:$4 sm:$0xff]   ;;  %v4622_v44 = vld [vmem:[%s5403_s1 + $0xc] ss:$16 sps:$4 sm:$0xff]  }
 0x1df   : > { %2585 = vmatprep.subr.bf16.mxu1 %v4540_v45  ;;  %v4625_v45 = vld [vmem:[%s5403_s1 + $0x20c] ss:$16 sps:$4 sm:$0xff]  }
 0x1e1   : > { %2545 = vmatpush2.bf16.msra.mxu0 %v4535_v46  ;;  %v4620_v46 = vld [vmem:[%s5403_s1 + $0x8] ss:$16 sps:$4 sm:$0xff]  }
 0x1e2   : > { %2586 = vmatpush2.bf16.msra.mxu1 %v4538_v47  ;;  %2546 = vmatprep.subr.bf16.mxu0 %v4543_v49  ;;  %v4623_v47 = vld [vmem:[%s5403_s1 + $0x208] ss:$16 sps:$4 sm:$0xff]   ;;  %v4628_v49 = vld [vmem:[%s5403_s1 + $0x1ec] ss:$16 sps:$4 sm:$0xff]  }
 0x1e3   : > { %2587 = vmatprep.subr.bf16.mxu1 %v4546_v50  ;;  %v4631_v50 = vld [vmem:[%s5403_s1 + $0x3ec] ss:$16 sps:$4 sm:$0xff]  }
 0x1e5   : > { %2547 = vmatpush2.bf16.msra.mxu0 %v4541_v51  ;;  %v4626_v51 = vld [vmem:[%s5403_s1 + $0x1e8] ss:$16 sps:$4 sm:$0xff]  }
 0x1e6   : > { %2588 = vmatpush2.bf16.msra.mxu1 %v4544_v52  ;;  %2548 = vmatprep.subr.bf16.mxu0 %v4549_v53  ;;  %v4629_v52 = vld [vmem:[%s5403_s1 + $0x3e8] ss:$16 sps:$4 sm:$0xff]   ;;  %v4634_v53 = vld [vmem:[%s5403_s1 + $0x1cc] ss:$16 sps:$4 sm:$0xff]  }
 0x1e7   : > { %2589 = vmatprep.subr.bf16.mxu1 %v4552_v54  ;;  %v4637_v54 = vld [vmem:[%s5403_s1 + $0x3cc] ss:$16 sps:$4 sm:$0xff]  }
 0x1e9   : > { %2549 = vmatpush2.bf16.msra.mxu0 %v4547_v55  ;;  %v4632_v55 = vld [vmem:[%s5403_s1 + $0x1c8] ss:$16 sps:$4 sm:$0xff]  }
 0x1ea   : > { %2590 = vmatpush2.bf16.msra.mxu1 %v4550_v56  ;;  %2550 = vmatprep.subr.bf16.mxu0 %v4555_v57  ;;  %v4635_v56 = vld [vmem:[%s5403_s1 + $0x3c8] ss:$16 sps:$4 sm:$0xff]   ;;  %v4640_v57 = vld [vmem:[%s5403_s1 + $0x1ac] ss:$16 sps:$4 sm:$0xff]  }
 0x1eb   : > { %2591 = vmatprep.subr.bf16.mxu1 %v4558_v58  ;;  %v4643_v58 = vld [vmem:[%s5403_s1 + $0x3ac] ss:$16 sps:$4 sm:$0xff]  }
 0x1ed   : > { %2551 = vmatpush2.bf16.msra.mxu0 %v4553_v59  ;;  %v4638_v59 = vld [vmem:[%s5403_s1 + $0x1a8] ss:$16 sps:$4 sm:$0xff]  }
 0x1ee   : > { %2592 = vmatpush2.bf16.msra.mxu1 %v4556_v60  ;;  %2552 = vmatprep.subr.bf16.mxu0 %v4561_v63  ;;  %v4641_v60 = vld [vmem:[%s5403_s1 + $0x3a8] ss:$16 sps:$4 sm:$0xff]   ;;  %v4646_v63 = vld [vmem:[%s5403_s1 + $0x18c] ss:$16 sps:$4 sm:$0xff]  }
 0x1ef   : > { %2593 = vmatprep.subr.bf16.mxu1 %v4564_v0  ;;  %v4649_v0 = vld [vmem:[%s5403_s1 + $0x38c] ss:$16 sps:$4 sm:$0xff]  }
 0x1f1   : > { %2553 = vmatpush2.bf16.msra.mxu0 %v4559_v1  ;;  %v4644_v1 = vld [vmem:[%s5403_s1 + $0x188] ss:$16 sps:$4 sm:$0xff]  }
 0x1f2   : > { %2594 = vmatpush2.bf16.msra.mxu1 %v4562_v2  ;;  %2554 = vmatprep.subr.bf16.mxu0 %v4567_v3  ;;  %v4647_v2 = vld [vmem:[%s5403_s1 + $0x388] ss:$16 sps:$4 sm:$0xff]   ;;  %v4652_v3 = vld [vmem:[%s5403_s1 + $0x16c] ss:$16 sps:$4 sm:$0xff]  }
 0x1f3   : > { %2595 = vmatprep.subr.bf16.mxu1 %v4570_v4  ;;  %v4655_v4 = vld [vmem:[%s5403_s1 + $0x36c] ss:$16 sps:$4 sm:$0xff]  }
 0x1f5   : > { %2555 = vmatpush2.bf16.msra.mxu0 %v4565_v5  ;;  %v4650_v5 = vld [vmem:[%s5403_s1 + $0x168] ss:$16 sps:$4 sm:$0xff]  }
 0x1f6   : > { %2596 = vmatpush2.bf16.msra.mxu1 %v4568_v6  ;;  %2556 = vmatprep.subr.bf16.mxu0 %v4573_v7  ;;  %v4653_v6 = vld [vmem:[%s5403_s1 + $0x368] ss:$16 sps:$4 sm:$0xff]   ;;  %v4658_v7 = vld [vmem:[%s5403_s1 + $0x14c] ss:$16 sps:$4 sm:$0xff]  }
 0x1f7   : > { %2597 = vmatprep.subr.bf16.mxu1 %v4576_v8  ;;  %v4661_v8 = vld [vmem:[%s5403_s1 + $0x34c] ss:$16 sps:$4 sm:$0xff]  }
 0x1f9   : > { %2557 = vmatpush2.bf16.msra.mxu0 %v4571_v9  ;;  %v4656_v9 = vld [vmem:[%s5403_s1 + $0x148] ss:$16 sps:$4 sm:$0xff]  }
 0x1fa   : > { %2598 = vmatpush2.bf16.msra.mxu1 %v4574_v10  ;;  %2608 = vmatprep.subr.bf16.mxu0 %v4580_v11  ;;  %v4659_v10 = vld [vmem:[%s5403_s1 + $0x348] ss:$16 sps:$4 sm:$0xff]   ;;  %v4664_v11 = vld [vmem:[%s5403_s1 + $0x12c] ss:$16 sps:$4 sm:$0xff]  }
 0x1fb   : > { %2649 = vmatprep.subr.bf16.mxu1 %v4583_v12  ;;  %v4667_v12 = vld [vmem:[%s5403_s1 + $0x32c] ss:$16 sps:$4 sm:$0xff]  }
 0x1fc   : > { %2559 = vmatmul.mubr.bf16.vlgmr.msra.gmra.mxu0 %v5593_v13 }
 0x1fd   : > { %2600 = vmatmul.mubr.bf16.vlgmr.msra.gmra.mxu1 %v5597_v14  ;;  %2609 = vmatpush1.bf16.msra.mxu0 %v4578_v15  ;;  %v4662_v15 = vld [vmem:[%s5403_s1 + $0x128] ss:$16 sps:$4 sm:$0xff]  }
 0x1fe   : > { %2650 = vmatpush1.bf16.msra.mxu1 %v4581_v16  ;;  %2610 = vmatprep.subr.bf16.mxu0 %v4586_v17  ;;  %v4665_v16 = vld [vmem:[%s5403_s1 + $0x328] ss:$16 sps:$4 sm:$0xff]   ;;  %v4670_v17 = vld [vmem:[%s5403_s1 + $0x10c] ss:$16 sps:$4 sm:$0xff]  }
 0x1ff   : > { %2651 = vmatprep.subr.bf16.mxu1 %v4589_v18  ;;  %2640 = vmatprep.mubr.bf16.mxu0 %v5484_v43  ;;  %v4599_v43 = vld [vmem:[%s5403_s1 + $0x288] ss:$16 sps:$4 sm:$0xff]   ;;  %v4673_v18 = vld [vmem:[%s5403_s1 + $0x30c] ss:$16 sps:$4 sm:$0xff]  }
 0x200   : > { %2681 = vmatprep.mubr.bf16.mxu1 %v5489_v48  ;;  %v4604_v48 = vld [vmem:[%s5403_s1 + $0x6c] ss:$16 sps:$4 sm:$0xff]  }
 0x201   : > { %2611 = vmatpush1.bf16.msra.mxu0 %v4584_v19  ;;  %v4668_v19 = vld [vmem:[%s5403_s1 + $0x108] ss:$16 sps:$4 sm:$0xff]  }
 0x202   : > { %2652 = vmatpush1.bf16.msra.mxu1 %v4587_v20  ;;  %2612 = vmatprep.subr.bf16.mxu0 %v4592_v21  ;;  %v4671_v20 = vld [vmem:[%s5403_s1 + $0x308] ss:$16 sps:$4 sm:$0xff]   ;;  %v4676_v21 = vld [vmem:[%s5403_s1 + $0x4ec] ss:$16 sps:$4 sm:$0xff]  }
 0x203   : > { %2653 = vmatprep.subr.bf16.mxu1 %v4595_v22  ;;  %v4679_v22 = vld [vmem:[%s5403_s1 + $0x6ec] ss:$16 sps:$4 sm:$0xff]  }
 0x205   : > { %2613 = vmatpush1.bf16.msra.mxu0 %v4590_v23  ;;  %v4674_v23 = vld [vmem:[%s5403_s1 + $0x4e8] ss:$16 sps:$4 sm:$0xff]  }
 0x206   : > { %2654 = vmatpush1.bf16.msra.mxu1 %v4593_v25  ;;  %2614 = vmatprep.subr.bf16.mxu0 %v4598_v26  ;;  %v4677_v25 = vld [vmem:[%s5403_s1 + $0x6e8] ss:$16 sps:$4 sm:$0xff]   ;;  %v4682_v26 = vld [vmem:[%s5403_s1 + $0x4cc] ss:$16 sps:$4 sm:$0xff]  }
 0x207   : > { %2655 = vmatprep.subr.bf16.mxu1 %v4601_v27  ;;  %v4685_v27 = vld [vmem:[%s5403_s1 + $0x6cc] ss:$16 sps:$4 sm:$0xff]  }
 0x209   : > { %2615 = vmatpush1.bf16.msra.mxu0 %v4596_v28  ;;  %v4680_v28 = vld [vmem:[%s5403_s1 + $0x4c8] ss:$16 sps:$4 sm:$0xff]  }
 0x20a   : > { %2656 = vmatpush1.bf16.msra.mxu1 %v4599_v43  ;;  %2616 = vmatprep.subr.bf16.mxu0 %v4604_v48  ;;  %v4683_v43 = vld [vmem:[%s5403_s1 + $0x6c8] ss:$16 sps:$4 sm:$0xff]   ;;  %v4688_v48 = vld [vmem:[%s5403_s1 + $0x4ac] ss:$16 sps:$4 sm:$0xff]  }
 0x20b   : > { %2657 = vmatprep.subr.bf16.mxu1 %v4607_v29  ;;  %v4691_v29 = vld [vmem:[%s5403_s1 + $0x6ac] ss:$16 sps:$4 sm:$0xff]  }
 0x20d   : > { %2617 = vmatpush1.bf16.msra.mxu0 %v4602_v31  ;;  %v4686_v31 = vld [vmem:[%s5403_s1 + $0x4a8] ss:$16 sps:$4 sm:$0xff]  }
 0x20e   : > { %2658 = vmatpush1.bf16.msra.mxu1 %v4605_v32  ;;  %2618 = vmatprep.subr.bf16.mxu0 %v4610_v33  ;;  %v4689_v32 = vld [vmem:[%s5403_s1 + $0x6a8] ss:$16 sps:$4 sm:$0xff]  }
 0x20f   : > { %2659 = vmatprep.subr.bf16.mxu1 %v4613_v35  ;;  %v4692_v33 = vld [vmem:[%s5403_s1 + $0x488] ss:$16 sps:$4 sm:$0xff]  }
 0x210   : > { %v4695_v35 = vld [vmem:[%s5403_s1 + $0x688] ss:$16 sps:$4 sm:$0xff]  }
 0x211   : > { %2619 = vmatpush1.bf16.msra.mxu0 %v4608_v36  ;;  %v4700_v36 = vld [vmem:[%s5403_s1 + $0x46c] ss:$16 sps:$4 sm:$0xff]  }
 0x212   : > { %2660 = vmatpush1.bf16.msra.mxu1 %v4611_v37  ;;  %2620 = vmatprep.subr.bf16.mxu0 %v4616_v39  ;;  %v4701_v37 = vld [vmem:[%s5403_s1 + $0x668] ss:$16 sps:$4 sm:$0xff]   ;;  %v4706_v39 = vld [vmem:[%s5403_s1 + $0x44c] ss:$16 sps:$4 sm:$0xff]  }
 0x213   : > { %2661 = vmatprep.subr.bf16.mxu1 %v4619_v40  ;;  %v4709_v40 = vld [vmem:[%s5403_s1 + $0x64c] ss:$16 sps:$4 sm:$0xff]  }
 0x215   : > { %2621 = vmatpush1.bf16.msra.mxu0 %v4614_v41  ;;  %v4704_v41 = vld [vmem:[%s5403_s1 + $0x448] ss:$16 sps:$4 sm:$0xff]  }
 0x216   : > { %2662 = vmatpush1.bf16.msra.mxu1 %v4617_v42  ;;  %2622 = vmatprep.subr.bf16.mxu0 %v4622_v44  ;;  %v4707_v42 = vld [vmem:[%s5403_s1 + $0x648] ss:$16 sps:$4 sm:$0xff]   ;;  %v4712_v44 = vld [vmem:[%s5403_s1 + $0x42c] ss:$16 sps:$4 sm:$0xff]  }
 0x217   : > { %2663 = vmatprep.subr.bf16.mxu1 %v4625_v45  ;;  %v4715_v45 = vld [vmem:[%s5403_s1 + $0x62c] ss:$16 sps:$4 sm:$0xff]  }
 0x219   : > { %2623 = vmatpush1.bf16.msra.mxu0 %v4620_v46  ;;  %v4710_v46 = vld [vmem:[%s5403_s1 + $0x428] ss:$16 sps:$4 sm:$0xff]  }
 0x21a   : > { %2664 = vmatpush1.bf16.msra.mxu1 %v4623_v47  ;;  %2624 = vmatprep.subr.bf16.mxu0 %v4628_v49  ;;  %v4713_v47 = vld [vmem:[%s5403_s1 + $0x628] ss:$16 sps:$4 sm:$0xff]   ;;  %v4718_v49 = vld [vmem:[%s5403_s1 + $0x40c] ss:$16 sps:$4 sm:$0xff]  }
 0x21b   : > { %2665 = vmatprep.subr.bf16.mxu1 %v4631_v50  ;;  %v4721_v50 = vld [vmem:[%s5403_s1 + $0x60c] ss:$16 sps:$4 sm:$0xff]  }
 0x21d   : > { %2625 = vmatpush2.bf16.msra.mxu0 %v4626_v51  ;;  %v4716_v51 = vld [vmem:[%s5403_s1 + $0x408] ss:$16 sps:$4 sm:$0xff]  }
 0x21e   : > { %2666 = vmatpush2.bf16.msra.mxu1 %v4629_v52  ;;  %2626 = vmatprep.subr.bf16.mxu0 %v4634_v53  ;;  %v4719_v52 = vld [vmem:[%s5403_s1 + $0x608] ss:$16 sps:$4 sm:$0xff]   ;;  %v4724_v53 = vld [vmem:[%s5403_s1 + $0x5ec] ss:$16 sps:$4 sm:$0xff]  }
 0x21f   : > { %2667 = vmatprep.subr.bf16.mxu1 %v4637_v54  ;;  %v4727_v54 = vld [vmem:[%s5403_s1 + $0x7ec] ss:$16 sps:$4 sm:$0xff]  }
 0x221   : > { %2627 = vmatpush2.bf16.msra.mxu0 %v4632_v55  ;;  %v4722_v55 = vld [vmem:[%s5403_s1 + $0x5e8] ss:$16 sps:$4 sm:$0xff]  }
 0x222   : > { %2668 = vmatpush2.bf16.msra.mxu1 %v4635_v56  ;;  %2628 = vmatprep.subr.bf16.mxu0 %v4640_v57  ;;  %v4725_v56 = vld [vmem:[%s5403_s1 + $0x7e8] ss:$16 sps:$4 sm:$0xff]   ;;  %v4730_v57 = vld [vmem:[%s5403_s1 + $0x5cc] ss:$16 sps:$4 sm:$0xff]  }
 0x223   : > { %2669 = vmatprep.subr.bf16.mxu1 %v4643_v58  ;;  %v4733_v58 = vld [vmem:[%s5403_s1 + $0x7cc] ss:$16 sps:$4 sm:$0xff]  }
 0x225   : > { %2629 = vmatpush2.bf16.msra.mxu0 %v4638_v59  ;;  %v4728_v59 = vld [vmem:[%s5403_s1 + $0x5c8] ss:$16 sps:$4 sm:$0xff]  }
 0x226   : > { %2670 = vmatpush2.bf16.msra.mxu1 %v4641_v60  ;;  %2630 = vmatprep.subr.bf16.mxu0 %v4646_v63  ;;  %v4731_v60 = vld [vmem:[%s5403_s1 + $0x7c8] ss:$16 sps:$4 sm:$0xff]   ;;  %v4736_v63 = vld [vmem:[%s5403_s1 + $0x5ac] ss:$16 sps:$4 sm:$0xff]  }
 0x227   : > { %2671 = vmatprep.subr.bf16.mxu1 %v4649_v0  ;;  %v4739_v0 = vld [vmem:[%s5403_s1 + $0x7ac] ss:$16 sps:$4 sm:$0xff]  }
 0x229   : > { %2631 = vmatpush2.bf16.msra.mxu0 %v4644_v1  ;;  %v4734_v1 = vld [vmem:[%s5403_s1 + $0x5a8] ss:$16 sps:$4 sm:$0xff]  }
 0x22a   : > { %2672 = vmatpush2.bf16.msra.mxu1 %v4647_v2  ;;  %2632 = vmatprep.subr.bf16.mxu0 %v4652_v3  ;;  %v4737_v2 = vld [vmem:[%s5403_s1 + $0x7a8] ss:$16 sps:$4 sm:$0xff]   ;;  %v4742_v3 = vld [vmem:[%s5403_s1 + $0x58c] ss:$16 sps:$4 sm:$0xff]  }
 0x22b   : > { %2673 = vmatprep.subr.bf16.mxu1 %v4655_v4  ;;  %v4745_v4 = vld [vmem:[%s5403_s1 + $0x78c] ss:$16 sps:$4 sm:$0xff]  }
 0x22d   : > { %2633 = vmatpush2.bf16.msra.mxu0 %v4650_v5  ;;  %v4740_v5 = vld [vmem:[%s5403_s1 + $0x588] ss:$16 sps:$4 sm:$0xff]  }
 0x22e   : > { %2674 = vmatpush2.bf16.msra.mxu1 %v4653_v6  ;;  %2634 = vmatprep.subr.bf16.mxu0 %v4658_v7  ;;  %v4743_v6 = vld [vmem:[%s5403_s1 + $0x788] ss:$16 sps:$4 sm:$0xff]   ;;  %v4748_v7 = vld [vmem:[%s5403_s1 + $0x56c] ss:$16 sps:$4 sm:$0xff]  }
 0x22f   : > { %2675 = vmatprep.subr.bf16.mxu1 %v4661_v8  ;;  %v4751_v8 = vld [vmem:[%s5403_s1 + $0x76c] ss:$16 sps:$4 sm:$0xff]  }
 0x231   : > { %2635 = vmatpush2.bf16.msra.mxu0 %v4656_v9  ;;  %v4746_v9 = vld [vmem:[%s5403_s1 + $0x568] ss:$16 sps:$4 sm:$0xff]  }
 0x232   : > { %2676 = vmatpush2.bf16.msra.mxu1 %v4659_v10  ;;  %2636 = vmatprep.subr.bf16.mxu0 %v4664_v11  ;;  %v4749_v10 = vld [vmem:[%s5403_s1 + $0x768] ss:$16 sps:$4 sm:$0xff]   ;;  %v4754_v11 = vld [vmem:[%s5403_s1 + $0x54c] ss:$16 sps:$4 sm:$0xff]  }
 0x233   : > { %2677 = vmatprep.subr.bf16.mxu1 %v4667_v12  ;;  %v4757_v12 = vld [vmem:[%s5403_s1 + $0x74c] ss:$16 sps:$4 sm:$0xff]  }
 0x235   : > { %2637 = vmatpush2.bf16.msra.mxu0 %v4662_v15  ;;  %v4752_v15 = vld [vmem:[%s5403_s1 + $0x548] ss:$16 sps:$4 sm:$0xff]  }
 0x236   : > { %2678 = vmatpush2.bf16.msra.mxu1 %v4665_v16  ;;  %2638 = vmatprep.subr.bf16.mxu0 %v4670_v17  ;;  %v4755_v16 = vld [vmem:[%s5403_s1 + $0x748] ss:$16 sps:$4 sm:$0xff]   ;;  %v4760_v17 = vld [vmem:[%s5403_s1 + $0x52c] ss:$16 sps:$4 sm:$0xff]  }
 0x237   : > { %2679 = vmatprep.subr.bf16.mxu1 %v4673_v18  ;;  %v4763_v18 = vld [vmem:[%s5403_s1 + $0x72c] ss:$16 sps:$4 sm:$0xff]  }
 0x239   : > { %2639 = vmatpush2.bf16.msra.mxu0 %v4668_v19  ;;  %v4758_v19 = vld [vmem:[%s5403_s1 + $0x528] ss:$16 sps:$4 sm:$0xff]  }
 0x23a   : > { %2680 = vmatpush2.bf16.msra.mxu1 %v4671_v20  ;;  %2690 = vmatprep.subr.bf16.mxu0 %v4676_v21  ;;  %v4761_v20 = vld [vmem:[%s5403_s1 + $0x728] ss:$16 sps:$4 sm:$0xff]   ;;  %v4766_v21 = vld [vmem:[%s5403_s1 + $0x50c] ss:$16 sps:$4 sm:$0xff]  }
 0x23b   : > { %2731 = vmatprep.subr.bf16.mxu1 %v4679_v22  ;;  %v4769_v22 = vld [vmem:[%s5403_s1 + $0x70c] ss:$16 sps:$4 sm:$0xff]  }
 0x23c   : > { %2641 = vmatmul.mubr.bf16.vlgmr.msra.gmra.mxu0 %v5505_v61  ;;  %v4694_v61 = vld [vmem:[%s5403_s1 + $0x48c] ss:$16 sps:$4 sm:$0xff]  }
 0x23d   : > { %2682 = vmatmul.mubr.bf16.vlgmr.msra.gmra.mxu1 %v5507_v62  ;;  %2691 = vmatpush1.bf16.msra.mxu0 %v4674_v23  ;;  %v4697_v62 = vld [vmem:[%s5403_s1 + $0x68c] ss:$16 sps:$4 sm:$0xff]   ;;  %v4764_v23 = vld [vmem:[%s5403_s1 + $0x508] ss:$16 sps:$4 sm:$0xff]  }
 0x23e   : > { %2732 = vmatpush1.bf16.msra.mxu1 %v4677_v25  ;;  %2692 = vmatprep.subr.bf16.mxu0 %v4682_v26  ;;  %v4767_v25 = vld [vmem:[%s5403_s1 + $0x708] ss:$16 sps:$4 sm:$0xff]   ;;  %v4772_v26 = vld [vmem:[%s5411_s14 + $0xac] ss:$12 sps:$4 sm:$0xff]  }
 0x23f   : > { %2733 = vmatprep.subr.bf16.mxu1 %v4685_v27  ;;  %2722 = vmatprep.mubr.bf16.mxu0 %v5547_v34  ;;  %v4703_v34 = vld [vmem:[%s5403_s1 + $0x66c] ss:$16 sps:$4 sm:$0xff]  }
 0x240   : > { %2763 = vmatprep.mubr.bf16.mxu1 %v5553_v38  ;;  %v4698_v38 = vld [vmem:[%s5403_s1 + $0x468] ss:$16 sps:$4 sm:$0xff]   ;;  %v4770_v27 = vld [vmem:[%s5411_s14 + $0xa8] ss:$12 sps:$4 sm:$0xff]  }
 0x241   : > { %2693 = vmatpush1.bf16.msra.mxu0 %v4680_v28  ;;  %v4775_v28 = vld [vmem:[%s5411_s14 + $0x94] ss:$12 sps:$4 sm:$0xff]  }
 0x242   : > { %2734 = vmatpush1.bf16.msra.mxu1 %v4683_v43  ;;  %2694 = vmatprep.subr.bf16.mxu0 %v4688_v48 }
 0x243   : > { %2735 = vmatprep.subr.bf16.mxu1 %v4691_v29  ;;  %v4773_v29 = vld [vmem:[%s5411_s14 + $0x90] ss:$12 sps:$4 sm:$0xff]  }
 0x245   : > { %2695 = vmatpush1.bf16.msra.mxu0 %v4686_v31 }
 0x246   : > { %2736 = vmatpush1.bf16.msra.mxu1 %v4689_v32  ;;  %2696 = vmatprep.subr.bf16.mxu0 %v4694_v61  ;;  %v4778_v61 = vld [vmem:[%s5411_s14 + $0x7c] ss:$12 sps:$4 sm:$0xff]  }
 0x247   : > { %2737 = vmatprep.subr.bf16.mxu1 %v4697_v62 }
 0x249   : > { %2697 = vmatpush1.bf16.msra.mxu0 %v4692_v33 }
 0x24a   : > { %2738 = vmatpush1.bf16.msra.mxu1 %v4695_v35  ;;  %2698 = vmatprep.subr.bf16.mxu0 %v4700_v36  ;;  %v4781_v36 = vld [vmem:[%s5411_s14 + $0x64] ss:$12 sps:$4 sm:$0xff]  }
 0x24b   : > { %2739 = vmatprep.subr.bf16.mxu1 %v4703_v34  ;;  %v4834_v34 = vld [vmem:[%s5411_s14 + $0x228] ss:$12 sps:$4 sm:$0xff]  }
 0x24d   : > { %2699 = vmatpush1.bf16.msra.mxu0 %v4698_v38  ;;  %v4836_v38 = vld [vmem:[%s5411_s14 + $0x22c] ss:$12 sps:$4 sm:$0xff]  }
 0x24e   : > { %2740 = vmatpush1.bf16.msra.mxu1 %v4701_v37  ;;  %2700 = vmatprep.subr.bf16.mxu0 %v4706_v39  ;;  %v4839_v37 = vld [vmem:[%s5411_s14 + $0x214] ss:$12 sps:$4 sm:$0xff]  }
 0x24f   : > { %2741 = vmatprep.subr.bf16.mxu1 %v4709_v40  ;;  %v4779_v39 = vld [vmem:[%s5411_s14 + $0x60] ss:$12 sps:$4 sm:$0xff]   ;;  %v4837_v40 = vld [vmem:[%s5411_s14 + $0x210] ss:$12 sps:$4 sm:$0xff]  }
 0x251   : > { %2701 = vmatpush1.bf16.msra.mxu0 %v4704_v41  ;;  %v4784_v41 = vld [vmem:[%s5411_s14 + $0x4c] ss:$12 sps:$4 sm:$0xff]  }
 0x252   : > { %2742 = vmatpush1.bf16.msra.mxu1 %v4707_v42  ;;  %2702 = vmatprep.subr.bf16.mxu0 %v4712_v44  ;;  %v4842_v42 = vld [vmem:[%s5411_s14 + $0x1fc] ss:$12 sps:$4 sm:$0xff]  }
 0x253   : > { %2743 = vmatprep.subr.bf16.mxu1 %v4715_v45  ;;  %v4782_v44 = vld [vmem:[%s5411_s14 + $0x48] ss:$12 sps:$4 sm:$0xff]   ;;  %v4840_v45 = vld [vmem:[%s5411_s14 + $0x1f8] ss:$12 sps:$4 sm:$0xff]  }
 0x255   : > { %2703 = vmatpush1.bf16.msra.mxu0 %v4710_v46  ;;  %v4787_v46 = vld [vmem:[%s5411_s14 + $0x34] ss:$12 sps:$4 sm:$0xff]  }
 0x256   : > { %2744 = vmatpush1.bf16.msra.mxu1 %v4713_v47  ;;  %2704 = vmatprep.subr.bf16.mxu0 %v4718_v49  ;;  %v4845_v47 = vld [vmem:[%s5411_s14 + $0x1e4] ss:$12 sps:$4 sm:$0xff]  }
 0x257   : > { %2745 = vmatprep.subr.bf16.mxu1 %v4721_v50  ;;  %v4785_v49 = vld [vmem:[%s5411_s14 + $0x30] ss:$12 sps:$4 sm:$0xff]   ;;  %v4843_v50 = vld [vmem:[%s5411_s14 + $0x1e0] ss:$12 sps:$4 sm:$0xff]  }
 0x259   : > { %2705 = vmatpush1.bf16.msra.mxu0 %v4716_v51  ;;  %v4790_v51 = vld [vmem:[%s5411_s14 + $0x1c] ss:$12 sps:$4 sm:$0xff]  }
 0x25a   : > { %2746 = vmatpush1.bf16.msra.mxu1 %v4719_v52  ;;  %2706 = vmatprep.subr.bf16.mxu0 %v4724_v53  ;;  %v4848_v52 = vld [vmem:[%s5411_s14 + $0x1cc] ss:$12 sps:$4 sm:$0xff]  }
 0x25b   : > { %2747 = vmatprep.subr.bf16.mxu1 %v4727_v54  ;;  %v4788_v53 = vld [vmem:[%s5411_s14 + $0x18] ss:$12 sps:$4 sm:$0xff]   ;;  %v4846_v54 = vld [vmem:[%s5411_s14 + $0x1c8] ss:$12 sps:$4 sm:$0xff]  }
 0x25d   : > { %2707 = vmatpush2.bf16.msra.mxu0 %v4722_v55  ;;  %v4793_v55 = vld [vmem:[%s5411_s14 + $0x4] ss:$12 sps:$4 sm:$0xff]  }
 0x25e   : > { %2748 = vmatpush2.bf16.msra.mxu1 %v4725_v56  ;;  %2708 = vmatprep.subr.bf16.mxu0 %v4730_v57  ;;  %v4851_v56 = vld [vmem:[%s5411_s14 + $0x1b4] ss:$12 sps:$4 sm:$0xff]  }
 0x25f   : > { %2749 = vmatprep.subr.bf16.mxu1 %v4733_v58  ;;  %v4791_v57 = vld [vmem:[%s5411_s14] ss:$12 sps:$4 sm:$0xff]   ;;  %v4849_v58 = vld [vmem:[%s5411_s14 + $0x1b0] ss:$12 sps:$4 sm:$0xff]  }
 0x261   : > { %2709 = vmatpush2.bf16.msra.mxu0 %v4728_v59  ;;  %v4796_v59 = vld [vmem:[%s5411_s14 + $0x16c] ss:$12 sps:$4 sm:$0xff]  }
 0x262   : > { %2750 = vmatpush2.bf16.msra.mxu1 %v4731_v60  ;;  %2710 = vmatprep.subr.bf16.mxu0 %v4736_v63  ;;  %v4854_v60 = vld [vmem:[%s5411_s14 + $0x19c] ss:$12 sps:$4 sm:$0xff]  }
 0x263   : > { %2751 = vmatprep.subr.bf16.mxu1 %v4739_v0  ;;  %v4794_v63 = vld [vmem:[%s5411_s14 + $0x168] ss:$12 sps:$4 sm:$0xff]   ;;  %v4852_v0 = vld [vmem:[%s5411_s14 + $0x198] ss:$12 sps:$4 sm:$0xff]  }
 0x265   : > { %2711 = vmatpush2.bf16.msra.mxu0 %v4734_v1  ;;  %v4799_v1 = vld [vmem:[%s5411_s14 + $0x154] ss:$12 sps:$4 sm:$0xff]  }
 0x266   : > { %2752 = vmatpush2.bf16.msra.mxu1 %v4737_v2  ;;  %2712 = vmatprep.subr.bf16.mxu0 %v4742_v3  ;;  %v4857_v2 = vld [vmem:[%s5411_s14 + $0x184] ss:$12 sps:$4 sm:$0xff]  }
 0x267   : > { %2753 = vmatprep.subr.bf16.mxu1 %v4745_v4  ;;  %v4797_v3 = vld [vmem:[%s5411_s14 + $0x150] ss:$12 sps:$4 sm:$0xff]   ;;  %v4855_v4 = vld [vmem:[%s5411_s14 + $0x180] ss:$12 sps:$4 sm:$0xff]  }
 0x269   : > { %2713 = vmatpush2.bf16.msra.mxu0 %v4740_v5  ;;  %v4802_v5 = vld [vmem:[%s5411_s14 + $0x13c] ss:$12 sps:$4 sm:$0xff]  }
 0x26a   : > { %2754 = vmatpush2.bf16.msra.mxu1 %v4743_v6  ;;  %2714 = vmatprep.subr.bf16.mxu0 %v4748_v7  ;;  %v4860_v6 = vld [vmem:[%s5411_s14 + $0x2ec] ss:$12 sps:$4 sm:$0xff]  }
 0x26b   : > { %2755 = vmatprep.subr.bf16.mxu1 %v4751_v8  ;;  %v4800_v7 = vld [vmem:[%s5411_s14 + $0x138] ss:$12 sps:$4 sm:$0xff]   ;;  %v4858_v8 = vld [vmem:[%s5411_s14 + $0x2e8] ss:$12 sps:$4 sm:$0xff]  }
 0x26d   : > { %2715 = vmatpush2.bf16.msra.mxu0 %v4746_v9  ;;  %v4805_v9 = vld [vmem:[%s5411_s14 + $0x124] ss:$12 sps:$4 sm:$0xff]  }
 0x26e   : > { %2756 = vmatpush2.bf16.msra.mxu1 %v4749_v10  ;;  %2716 = vmatprep.subr.bf16.mxu0 %v4754_v11  ;;  %v4863_v10 = vld [vmem:[%s5411_s14 + $0x2d4] ss:$12 sps:$4 sm:$0xff]  }
 0x26f   : > { %2757 = vmatprep.subr.bf16.mxu1 %v4757_v12  ;;  %v4803_v11 = vld [vmem:[%s5411_s14 + $0x120] ss:$12 sps:$4 sm:$0xff]   ;;  %v4861_v12 = vld [vmem:[%s5411_s14 + $0x2d0] ss:$12 sps:$4 sm:$0xff]  }
 0x271   : > { %2717 = vmatpush2.bf16.msra.mxu0 %v4752_v15  ;;  %v4808_v15 = vld [vmem:[%s5411_s14 + $0x10c] ss:$12 sps:$4 sm:$0xff]  }
 0x272   : > { %2758 = vmatpush2.bf16.msra.mxu1 %v4755_v16  ;;  %2718 = vmatprep.subr.bf16.mxu0 %v4760_v17  ;;  %v4866_v16 = vld [vmem:[%s5411_s14 + $0x2bc] ss:$12 sps:$4 sm:$0xff]  }
 0x273   : > { %2759 = vmatprep.subr.bf16.mxu1 %v4763_v18  ;;  %v4806_v17 = vld [vmem:[%s5411_s14 + $0x108] ss:$12 sps:$4 sm:$0xff]   ;;  %v4864_v18 = vld [vmem:[%s5411_s14 + $0x2b8] ss:$12 sps:$4 sm:$0xff]  }
 0x275   : > { %2719 = vmatpush2.bf16.msra.mxu0 %v4758_v19  ;;  %v4811_v19 = vld [vmem:[%s5411_s14 + $0xf4] ss:$12 sps:$4 sm:$0xff]  }
 0x276   : > { %2760 = vmatpush2.bf16.msra.mxu1 %v4761_v20  ;;  %2720 = vmatprep.subr.bf16.mxu0 %v4766_v21  ;;  %v4869_v20 = vld [vmem:[%s5411_s14 + $0x2a4] ss:$12 sps:$4 sm:$0xff]  }
 0x277   : > { %2761 = vmatprep.subr.bf16.mxu1 %v4769_v22  ;;  %v4809_v21 = vld [vmem:[%s5411_s14 + $0xf0] ss:$12 sps:$4 sm:$0xff]   ;;  %v4867_v22 = vld [vmem:[%s5411_s14 + $0x2a0] ss:$12 sps:$4 sm:$0xff]  }
 0x279   : > { %2721 = vmatpush2.bf16.msra.mxu0 %v4764_v23  ;;  %v4814_v23 = vld [vmem:[%s5411_s14 + $0xdc] ss:$12 sps:$4 sm:$0xff]  }
 0x27a   : > { %2762 = vmatpush2.bf16.msra.mxu1 %v4767_v25  ;;  %3429 = vmatprep.subr.bf16.mxu0 %v4772_v26  ;;  %v4872_v25 = vld [vmem:[%s5411_s14 + $0x28c] ss:$12 sps:$4 sm:$0xff]   ;;  %v1146_v26 = vsub.s32 0, %v5465_v24 }
 0x27b   : > { %3470 = vmatprep.subr.bf16.mxu1 %v4836_v38 }
 0x27c   : > { %v5736_v43 = vpop.f32.mrf.mxu0  ;;  %2723 = vmatmul.mubr.bf16.vlgmr.msra.gmra.mxu0 %v5593_v13  ;;  %v4776_v13 = vld [vmem:[%s5411_s14 + $0x78] ss:$12 sps:$4 sm:$0xff]  }
 0x27d   : > { %v5738_v48 = vpop.f32.mrf.mxu1  ;;  %2764 = vmatmul.mubr.bf16.vlgmr.msra.gmra.mxu1 %v5597_v14  ;;  %3430 = vmatpush1.bf16.msra.mxu0 %v4770_v27  ;;  %v5799_v27 = vld [vmem:[%s5409_s3] sm:$0xf] }
 0x27e   : > { %v5743_v31 = vpop.f32.mrf.mxu0  ;;  %3431 = vmatprep.subr.bf16.mxu0 %v4775_v28  ;;  %3471 = vmatpush1.bf16.msra.mxu1 %v4834_v34  ;;  %v1150_v28 = vsub.s32 1, %v5465_v24 }
 0x27f   : > { %v5745_v32 = vpop.f32.mrf.mxu1  ;;  %3472 = vmatprep.subr.bf16.mxu1 %v4839_v37  ;;  %v4875_v37 = vld [vmem:[%s5411_s14 + $0x274] ss:$12 sps:$4 sm:$0xff]  }
 0x280   : > { %v2482_v62 = vpop.f32.mrf.mxu0 }
 0x281   : > { %v2523_v33 = vpop.f32.mrf.mxu1  ;;  %3432 = vmatpush1.bf16.msra.mxu0 %v4773_v29  ;;  %v4812_v29 = vld [vmem:[%s5411_s14 + $0xd8] ss:$12 sps:$4 sm:$0xff]  }
 0x282   : > { %v2483_v35 = vpop.f32.mrf.mxu0  ;;  %3433 = vmatprep.subr.bf16.mxu0 %v4778_v61  ;;  %3473 = vmatpush1.bf16.msra.mxu1 %v4837_v40  ;;  %v4870_v61 = vld [vmem:[%s5411_s14 + $0x288] ss:$12 sps:$4 sm:$0xff]   ;;  %v4817_v62 = vld [vmem:[%s5411_s14 + $0xc4] ss:$12 sps:$4 sm:$0xff]   ;;  %v1147_v33 = vrot.slane %v5799_v27, %v1146_v26 }
 0x283   : > { %v2524_v14 = vpop.f32.mrf.mxu1  ;;  %3474 = vmatprep.subr.bf16.mxu1 %v4842_v42  ;;  %v4815_v35 = vld [vmem:[%s5411_s14 + $0xc0] ss:$12 sps:$4 sm:$0xff]  }
 0x284   : > { %v4818_v14 = vld [vmem:[%s5411_s14 + $0x170] ss:$12 sps:$4 sm:$0xff]  }
 0x285   : > { %3434 = vmatpush1.bf16.msra.mxu0 %v4776_v13  ;;  %v1151_v13 = vrot.slane %v5799_v27, %v1150_v28 }
 0x286   : > { %3435 = vmatprep.subr.bf16.mxu0 %v4781_v36  ;;  %3475 = vmatpush1.bf16.msra.mxu1 %v4840_v45  ;;  %v2479_v36 = vadd.f32 %v5736_v43, %v1147_v33 }
 0x287   : > { %3476 = vmatprep.subr.bf16.mxu1 %v4845_v47  ;;  %v2481_v34 = vadd.f32 %v5743_v31, %v1151_v13  ;;  %v4878_v47 = vld [vmem:[%s5411_s14 + $0x25c] ss:$12 sps:$4 sm:$0xff]  }
 0x288   : > { %v2520_v38 = vadd.f32 %v5738_v48, %v2479_v36  ;;  %v4876_v48 = vld [vmem:[%s5411_s14 + $0x258] ss:$12 sps:$4 sm:$0xff]  }
 0x289   : > { %3436 = vmatpush1.bf16.msra.mxu0 %v4779_v39  ;;  %v2522_v42 = vadd.f32 %v5745_v32, %v2481_v34 }
 0x28a   : > { %3437 = vmatprep.subr.bf16.mxu0 %v4784_v41  ;;  %3477 = vmatpush1.bf16.msra.mxu1 %v4843_v50  ;;  %v4873_v41 = vld [vmem:[%s5411_s14 + $0x270] ss:$12 sps:$4 sm:$0xff]  }
 0x28b   : > { %3478 = vmatprep.subr.bf16.mxu1 %v4848_v52 }
 0x28d   : > { %3438 = vmatpush1.bf16.msra.mxu0 %v4782_v44 }
 0x28e   : > { %3439 = vmatprep.subr.bf16.mxu0 %v4787_v46  ;;  %3479 = vmatpush1.bf16.msra.mxu1 %v4846_v54 }
 0x28f   : > { %3480 = vmatprep.subr.bf16.mxu1 %v4851_v56 }
 0x291   : > { %3440 = vmatpush1.bf16.msra.mxu0 %v4785_v49 }
 0x292   : > { %3441 = vmatprep.subr.bf16.mxu0 %v4790_v51  ;;  %3481 = vmatpush1.bf16.msra.mxu1 %v4849_v58 }
 0x293   : > { %3482 = vmatprep.subr.bf16.mxu1 %v4854_v60  ;;  %v4819_v60 = vld [vmem:[%s5411_s14 + $0xb0] ss:$12 sps:$4 sm:$0xff]  }
 0x295   : > { %3442 = vmatpush1.bf16.msra.mxu0 %v4788_v53 }
 0x296   : > { %3443 = vmatprep.subr.bf16.mxu0 %v4793_v55  ;;  %3483 = vmatpush1.bf16.msra.mxu1 %v4852_v0  ;;  %v4881_v55 = vld [vmem:[%s5411_s14 + $0x244] ss:$12 sps:$4 sm:$0xff]  }
 0x297   : > { %3484 = vmatprep.subr.bf16.mxu1 %v4857_v2  ;;  %v4820_v0 = vld [vmem:[%s5411_s14 + $0x158] ss:$12 sps:$4 sm:$0xff]  }
 0x298   : > { %v4821_v2 = vld [vmem:[%s5411_s14 + $0x98] ss:$12 sps:$4 sm:$0xff]  }
 0x299   : > { %3444 = vmatpush1.bf16.msra.mxu0 %v4791_v57  ;;  %v4879_v57 = vld [vmem:[%s5411_s14 + $0x240] ss:$12 sps:$4 sm:$0xff]  }
 0x29a   : > { %3445 = vmatprep.subr.bf16.mxu0 %v4796_v59  ;;  %3485 = vmatpush1.bf16.msra.mxu1 %v4855_v4  ;;  %v4823_v4 = vld [vmem:[%s5411_s14 + $0x80] ss:$12 sps:$4 sm:$0xff]  }
 0x29b   : > { %3486 = vmatprep.subr.bf16.mxu1 %v4860_v6  ;;  %v4825_v6 = vld [vmem:[%s5411_s14 + $0x68] ss:$12 sps:$4 sm:$0xff]  }
 0x29d   : > { %3446 = vmatpush2.bf16.msra.mxu0 %v4794_v63 }
 0x29e   : > { %3447 = vmatprep.subr.bf16.mxu0 %v4799_v1  ;;  %3487 = vmatpush2.bf16.msra.mxu1 %v4858_v8  ;;  %v4882_v1 = vld [vmem:[%s5411_s14 + $0x2f0] ss:$12 sps:$4 sm:$0xff]  }
 0x29f   : > { %3488 = vmatprep.subr.bf16.mxu1 %v4863_v10  ;;  %v4827_v8 = vld [vmem:[%s5411_s14 + $0x50] ss:$12 sps:$4 sm:$0xff]   ;;  %v4829_v10 = vld [vmem:[%s5411_s14 + $0x38] ss:$12 sps:$4 sm:$0xff]  }
 0x2a1   : > { %3448 = vmatpush2.bf16.msra.mxu0 %v4797_v3  ;;  %v4822_v3 = vld [vmem:[%s5411_s14 + $0x140] ss:$12 sps:$4 sm:$0xff]  }
 0x2a2   : > { %3449 = vmatprep.subr.bf16.mxu0 %v4802_v5  ;;  %3489 = vmatpush2.bf16.msra.mxu1 %v4861_v12  ;;  %v4824_v5 = vld [vmem:[%s5411_s14 + $0x128] ss:$12 sps:$4 sm:$0xff]   ;;  %v4831_v12 = vld [vmem:[%s5411_s14 + $0x20] ss:$12 sps:$4 sm:$0xff]  }
 0x2a3   : > { %3490 = vmatprep.subr.bf16.mxu1 %v4866_v16  ;;  %v4833_v16 = vld [vmem:[%s5411_s14 + $0x8] ss:$12 sps:$4 sm:$0xff]  }
 0x2a5   : > { %3450 = vmatpush2.bf16.msra.mxu0 %v4800_v7  ;;  %v4826_v7 = vld [vmem:[%s5411_s14 + $0x110] ss:$12 sps:$4 sm:$0xff]  }
 0x2a6   : > { %3451 = vmatprep.subr.bf16.mxu0 %v4805_v9  ;;  %3491 = vmatpush2.bf16.msra.mxu1 %v4864_v18  ;;  %v4828_v9 = vld [vmem:[%s5411_s14 + $0xf8] ss:$12 sps:$4 sm:$0xff]  }
 0x2a7   : > { %3492 = vmatprep.subr.bf16.mxu1 %v4869_v20 }
 0x2a9   : > { %3452 = vmatpush2.bf16.msra.mxu0 %v4803_v11  ;;  %v4830_v11 = vld [vmem:[%s5411_s14 + $0xe0] ss:$12 sps:$4 sm:$0xff]  }
 0x2aa   : > { %3453 = vmatprep.subr.bf16.mxu0 %v4808_v15  ;;  %3493 = vmatpush2.bf16.msra.mxu1 %v4867_v22  ;;  %v4832_v15 = vld [vmem:[%s5411_s14 + $0xc8] ss:$12 sps:$4 sm:$0xff]  }
 0x2ab   : > { %3494 = vmatprep.subr.bf16.mxu1 %v4872_v25 }
 0x2ad   : > { %3454 = vmatpush2.bf16.msra.mxu0 %v4806_v17 }
 0x2ae   : > { %3455 = vmatprep.subr.bf16.mxu0 %v4811_v19  ;;  %3495 = vmatpush2.bf16.msra.mxu1 %v4870_v61  ;;  %v1158_v61 = vsub.s32 3, %v5465_v24 }
 0x2af   : > { %3496 = vmatprep.subr.bf16.mxu1 %v4875_v37 }
 0x2b0   : > { %v1159_v33 = vrot.slane %v5799_v27, %v1158_v61 }
 0x2b1   : > { %3456 = vmatpush2.bf16.msra.mxu0 %v4809_v21 }
 0x2b2   : > { %3457 = vmatprep.subr.bf16.mxu0 %v4814_v23  ;;  %3497 = vmatpush2.bf16.msra.mxu1 %v4873_v41 }
 0x2b3   : > { %3498 = vmatprep.subr.bf16.mxu1 %v4878_v47 }
 0x2b5   : > { %3458 = vmatpush2.bf16.msra.mxu0 %v4812_v29  ;;  %v1154_v29 = vsub.s32 2, %v5465_v24 }
 0x2b6   : > { %3459 = vmatprep.subr.bf16.mxu0 %v4817_v62  ;;  %3499 = vmatpush2.bf16.msra.mxu1 %v4876_v48 }
 0x2b7   : > { %3500 = vmatprep.subr.bf16.mxu1 %v4881_v55  ;;  %v1155_v62 = vrot.slane %v5799_v27, %v1154_v29  ;;  %v4887_v55 = vld [vmem:[%s5411_s14 + $0x200] ss:$12 sps:$4 sm:$0xff]  }
 0x2b9   : > { %3460 = vmatpush2.bf16.msra.mxu0 %v4815_v35 }
 0x2ba   : > { %4213 = vmatprep.subr.bf16.mxu0 %v4818_v14  ;;  %3501 = vmatpush2.bf16.msra.mxu1 %v4879_v57  ;;  %v4889_v57 = vld [vmem:[%s5411_s14 + $0x1e8] ss:$12 sps:$4 sm:$0xff]  }
 0x2bb   : > { %4235 = vmatprep.subr.bf16.mxu1 %v4882_v1  ;;  %v4895_v1 = vld [vmem:[%s5411_s14 + $0x1a0] ss:$12 sps:$4 sm:$0xff]  }
 0x2bc   : > { %v2560_v39 = vpop.f32.mrf.mxu0 }
 0x2bd   : > { %v2601_v40 = vpop.f32.mrf.mxu1  ;;  %v2561_v44 = vadd.f32 %v2560_v39, %v2520_v38 }
 0x2be   : > { %v2562_v45 = vpop.f32.mrf.mxu0 }
 0x2bf   : > { %v2603_v46 = vpop.f32.mrf.mxu1  ;;  %v2602_v43 = vadd.f32 %v2601_v40, %v2561_v44  ;;  %v2563_v31 = vadd.f32 %v2562_v45, %v2522_v42 }
 0x2c0   : > { %v2564_v49 = vpop.f32.mrf.mxu0 }
 0x2c1   : > { %v2605_v50 = vpop.f32.mrf.mxu1  ;;  %vm2772_vm9 = vcmp.gt.f32.partialorder %v2602_v43, 0.0  ;;  %v2776_v51 = vmul.f32 0.01, %v2602_v43  ;;  %v2604_v52 = vadd.f32 %v2603_v46, %v2563_v31 }
 0x2c2   : > { %v2565_v32 = vpop.f32.mrf.mxu0 }
 0x2c3   : > { %v2606_v53 = vpop.f32.mrf.mxu1  ;;  %vm2773_vm10 = vcmp.gt.f32.partialorder %v2604_v52, 0.0  ;;  %v2777_v54 = vmul.f32 0.01, %v2604_v52  ;;  %v2780_v56 = vsel %vm2772_vm9, %v2602_v43, %v2776_v51  ;;  %v4883_v51 = vld [vmem:[%s5411_s14 + $0x230] ss:$12 sps:$4 sm:$0xff]  }
 0x2c4   : > { %v2784_v63 = vpack.c.bf16 %v2780_v56, %v2780_v56  ;;  %v4884_v32 = vld [vmem:[%s5411_s14 + $0x2d8] ss:$12 sps:$4 sm:$0xff]   ;;  %v4888_v56 = vld [vmem:[%s5411_s14 + $0x2a8] ss:$12 sps:$4 sm:$0xff]  }
 0x2c5   : > { %v2781_v58 = vsel %vm2773_vm10, %v2604_v52, %v2777_v54  ;;  %v4885_v53 = vld [vmem:[%s5411_s14 + $0x218] ss:$12 sps:$4 sm:$0xff]   ;;  %v4886_v54 = vld [vmem:[%s5411_s14 + $0x2c0] ss:$12 sps:$4 sm:$0xff]  }
 0x2c6   : > { %v2785_v59 = vpack.c.bf16 %v2781_v58, %v2781_v58  ;;  %v4890_v58 = vld [vmem:[%s5411_s14 + $0x290] ss:$12 sps:$4 sm:$0xff]  }
 0x2c8   : > { %3461 = vmatprep.mubr.bf16.mxu0 %v2785_v59 }
 0x2c9   : > { %3462 = vmatmul.mubr.bf16.vlgmr.msra.gmra.mxu0 %v2784_v63 }
 0x2ca   : > { %4214 = vmatpush3.bf16.msra.mxu0 %v4819_v60  ;;  %3543 = vmatprep.mubr.bf16.mxu0 %v2785_v59  ;;  %v4891_v59 = vld [vmem:[%s5411_s14 + $0x1d0] ss:$12 sps:$4 sm:$0xff]   ;;  %v4892_v60 = vld [vmem:[%s5411_s14 + $0x278] ss:$12 sps:$4 sm:$0xff]  }
 0x2cb   : > { %4215 = vmatprep.subr.bf16.mxu0 %v4820_v0  ;;  %v4894_v0 = vld [vmem:[%s5411_s14 + $0x260] ss:$12 sps:$4 sm:$0xff]  }
 0x2ce   : > { %4216 = vmatpush3.bf16.msra.mxu0 %v4821_v2  ;;  %v4896_v2 = vld [vmem:[%s5411_s14 + $0x248] ss:$12 sps:$4 sm:$0xff]  }
 0x2cf   : > { %4217 = vmatprep.subr.bf16.mxu0 %v4822_v3  ;;  %v4897_v3 = vld [vmem:[%s5411_s14 + $0x188] ss:$12 sps:$4 sm:$0xff]  }
 0x2d2   : > { %4218 = vmatpush3.bf16.msra.mxu0 %v4823_v4 }
 0x2d3   : > { %4219 = vmatprep.subr.bf16.mxu0 %v4824_v5 }
 0x2d6   : > { %4220 = vmatpush3.bf16.msra.mxu0 %v4825_v6 }
 0x2d7   : > { %4221 = vmatprep.subr.bf16.mxu0 %v4826_v7 }
 0x2da   : > { %4222 = vmatpush3.bf16.msra.mxu0 %v4827_v8 }
 0x2db   : > { %4223 = vmatprep.subr.bf16.mxu0 %v4828_v9 }
 0x2de   : > { %4224 = vmatpush3.bf16.msra.mxu0 %v4829_v10 }
 0x2df   : > { %4225 = vmatprep.subr.bf16.mxu0 %v4830_v11 }
 0x2e2   : > { %4226 = vmatpush3.bf16.msra.mxu0 %v4831_v12 }
 0x2e3   : > { %4227 = vmatprep.subr.bf16.mxu0 %v4832_v15 }
 0x2e6   : > { %4228 = vmatpush3.bf16.msra.mxu0 %v4833_v16 }
 0x2e9   : > { %3544 = vmatmul.mubr.bf16.vlgmr.msra.gmra.mxu0 %v2784_v63  ;;  %v4893_v63 = vld [vmem:[%s5411_s14 + $0x1b8] ss:$12 sps:$4 sm:$0xff]  }
 0x2fc   : > { %v2642_v17 = vpop.f32.mrf.mxu0 }
 0x2fd   : > { %v2683_v18 = vpop.f32.mrf.mxu1  ;;  %v2643_v13 = vadd.f32 %v2642_v17, %v1155_v62 }
 0x2fe   : > { %v2644_v19 = vpop.f32.mrf.mxu0 }
 0x2ff   : > { %v2685_v20 = vpop.f32.mrf.mxu1  ;;  %v2645_v35 = vadd.f32 %v2644_v19, %v1159_v33  ;;  %v2684_v14 = vadd.f32 %v2683_v18, %v2643_v13 }
 0x300   : > { %v2646_v21 = vpop.f32.mrf.mxu0 }
 0x301   : > { %v2687_v22 = vpop.f32.mrf.mxu1  ;;  %v2686_v38 = vadd.f32 %v2685_v20, %v2645_v35 }
 0x302   : > { %v2647_v23 = vpop.f32.mrf.mxu0 }
 0x303   : > { %v2688_v25 = vpop.f32.mrf.mxu1 }
 0x33c   : > { %v2724_v36 = vpop.f32.mrf.mxu0 }
 0x33d   : > { %v2765_v34 = vpop.f32.mrf.mxu1  ;;  %v2725_v37 = vadd.f32 %v2724_v36, %v2684_v14  ;;  %v2788_v14 = vld [vmem:[#allocation3] sm:$0x3f] }
 0x33e   : > { %v2726_v39 = vpop.f32.mrf.mxu0 }
 0x33f   : > { %v2767_v40 = vpop.f32.mrf.mxu1  ;;  %v2766_v41 = vadd.f32 %v2765_v34, %v2725_v37  ;;  %v2727_v42 = vadd.f32 %v2726_v39, %v2686_v38 }
 0x340   : > { %v2728_v44 = vpop.f32.mrf.mxu0 }
 0x341   : > { %v2769_v45 = vpop.f32.mrf.mxu1  ;;  %vm2774_vm11 = vcmp.gt.f32.partialorder %v2766_v41, 0.0  ;;  %v2778_v46 = vmul.f32 0.01, %v2766_v41  ;;  %v2768_v43 = vadd.f32 %v2767_v40, %v2727_v42 }
 0x342   : > { %v2729_v27 = vpop.f32.mrf.mxu0 }
 0x343   : > { %v2770_v31 = vpop.f32.mrf.mxu1  ;;  %vm2775_vm12 = vcmp.gt.f32.partialorder %v2768_v43, 0.0  ;;  %v2779_v47 = vmul.f32 0.01, %v2768_v43  ;;  %v2782_v49 = vsel %vm2774_vm11, %v2766_v41, %v2778_v46 }
 0x344   : > { %v2786_v52 = vpack.c.bf16 %v2782_v49, %v2782_v49 }
 0x345   : > { %v2783_v50 = vsel %vm2775_vm12, %v2768_v43, %v2779_v47 }
 0x346   : > { %v2787_v48 = vpack.c.bf16 %v2783_v50, %v2783_v50 }
 0x348   : > { %3502 = vmatprep.mubr.bf16.mxu1 %v2787_v48 }
 0x349   : > { %3503 = vmatmul.mubr.bf16.vlgmr.msra.gmra.mxu1 %v2786_v52 }
 0x34a   : > { %4236 = vmatpush3.bf16.msra.mxu1 %v4883_v51  ;;  %3583 = vmatprep.mubr.bf16.mxu1 %v2787_v48 }
 0x34b   : > { %4237 = vmatprep.subr.bf16.mxu1 %v4884_v32 }
 0x34e   : > { %4238 = vmatpush3.bf16.msra.mxu1 %v4885_v53 }
 0x34f   : > { %4239 = vmatprep.subr.bf16.mxu1 %v4886_v54 }
 0x352   : > { %4240 = vmatpush3.bf16.msra.mxu1 %v4887_v55 }
 0x353   : > { %4241 = vmatprep.subr.bf16.mxu1 %v4888_v56 }
 0x356   : > { %4242 = vmatpush3.bf16.msra.mxu1 %v4889_v57 }
 0x357   : > { %4243 = vmatprep.subr.bf16.mxu1 %v4890_v58 }
 0x35a   : > { %4244 = vmatpush3.bf16.msra.mxu1 %v4891_v59 }
 0x35b   : > { %4245 = vmatprep.subr.bf16.mxu1 %v4892_v60 }
 0x35e   : > { %4246 = vmatpush3.bf16.msra.mxu1 %v4893_v63 }
 0x35f   : > { %4247 = vmatprep.subr.bf16.mxu1 %v4894_v0 }
 0x362   : > { %4248 = vmatpush3.bf16.msra.mxu1 %v4895_v1 }
 0x363   : > { %4249 = vmatprep.subr.bf16.mxu1 %v4896_v2 }
 0x366   : > { %4250 = vmatpush3.bf16.msra.mxu1 %v4897_v3 }
 0x369   : > { %3584 = vmatmul.mubr.bf16.vlgmr.msra.gmra.mxu1 %v2786_v52 }
 0x389   : > { %v3463_v4 = vpop.f32.mrf.mxu0 }
 0x38b   : > { %v3465_v5 = vpop.f32.mrf.mxu0 }
 0x38d   : > { %v3467_v6 = vpop.f32.mrf.mxu0 }
 0x38f   : > { %v3468_v7 = vpop.f32.mrf.mxu0 }
 0x3a9   : > { %v4229_v8 = vpop.f32.mrf.mxu0 }
 0x3ab   : > { %v4230_v9 = vpop.f32.mrf.mxu0 }
 0x3ac   : > { %v4231_v10 = vadd.f32 %v4230_v9, %v4229_v8 }
 0x3ad   : > { %v4232_v11 = vpop.f32.mrf.mxu0 }
 0x3af   : > { %v4233_v12 = vpop.f32.mrf.mxu0 }
 0x409   : > { %v3504_v15 = vpop.f32.mrf.mxu1 }
 0x40a   : > { %v3505_v21 = vadd.f32 %v3504_v15, %v3463_v4 }
 0x40b   : > { %v3506_v16 = vpop.f32.mrf.mxu1 }
 0x40c   : > { %v3507_v19 = vadd.f32 %v3506_v16, %v3465_v5 }
 0x40d   : > { %v3508_v17 = vpop.f32.mrf.mxu1 }
 0x40e   : > { %v3594_v23 = vcombine.low %v3505_v21, %v3507_v19 }
 0x40f   : > { %v3509_v18 = vpop.f32.mrf.mxu1 }
 0x410   : > { %v3601_v13 = vrot.slane %v3594_v23, %v5473_v30 }
 0x429   : > { %v4251_v20 = vpop.f32.mrf.mxu1 }
 0x42b   : > { %v4252_v22 = vpop.f32.mrf.mxu1 }
 0x42c   : > { %v4253_v25 = vadd.f32 %v4252_v22, %v4251_v20 }
 0x42d   : > { %v4254_v61 = vpop.f32.mrf.mxu1 }
 0x42e   : > { %v3586_v62 = vadd.f32 %v4253_v25, %v4231_v10 }
 0x42f   : > { %v4255_v33 = vpop.f32.mrf.mxu1 }
 0x430   : > { %v3608_v35 = vrot.slane %v3586_v62, %v5473_v30 }
 0x432   : > { %v3609_v36 = vcombine.low %v3601_v13, %v3608_v35  ;;  %3616 = sbr.rel (%p4206_p4) target bundleno = 1091 (0x443), region = 84 }
 0x434   : > { %v3611_v34 = vadd.f32 %v3609_v36, %v2788_v14 }
 0x436   : > { %3612 = vst [vmem:[#allocation3] sm:$0x3f] %v3611_v34 }
 0x437   : > { %v3618_v38 = vld [vmem:[#allocation15] sm:$0x7] }
 0x438   : > { %v3623_v37 = vrot.slane %v3618_v38, %v1146_v26  ;;  %v3627_v39 = vrot.slane %v3618_v38, %v1150_v28  ;;  %v3631_v40 = vrot.slane %v3618_v38, %v1154_v29 }
 0x43a   : > { %v3632_v41 = vcombine.low %v3623_v37, %v3627_v39  ;;  %v3646_v42 = vrot.slane %v3631_v40, %v5473_v30 }
 0x43c   : > { %v3639_v44 = vrot.slane %v3632_v41, %v5473_v30 }
 0x43d   : > { %v3617_v45 = vld [vmem:[#allocation3] sm:$0x3f] }
 0x43e   : > { %v3647_v46 = vcombine.low %v3639_v44, %v3646_v42 }
 0x440   : > { %v3649_v43 = vadd.f32 %v3647_v46, %v3617_v45 }
 0x442   : > { %3650 = vst [vmem:[#allocation16] sm:$0x3f] %v3649_v43 }
 0x443 PF: > { %p4318_p6 = scmp.eq.s32.totalorder %s5270_s30, 3  ;;  %s5200_s27 = smov [#allocation16]  }
 0x444   : > { %s3661_s8 = sshll.u32 %s5200_s27, 4  ;;  %s3662_s8 = int_to_ptr.vmem [resolvable:$true] %s3661_s8 }
 0x445   : > { %s5086_s19 = scalar_lea.vmem %s3662_s8, 96  ;;  %p5093_p9 = scmp.lt.s32.totalorder %s3662_s8, %s3662_s8 }
 0x446   : > { %p5087_p1 = scmp.ne.s32.totalorder %s3662_s8, %s5086_s19  ;;  %p5094_p10 = scmp.lt.s32.totalorder %s5086_s19, %s5086_s19 }
 0x448   : > { %p5088_p8 = pnand %p5087_p1, %p4318_p6  ;;  %p5095_p7 = por %p5094_p10, %p5093_p9 }
 0x44a   : > { %p5089_p11 = pneg %p5088_p8 }
 0x44c   : > { %p5096_p13 = pnand %p5095_p7, %p5089_p11 }
 0x44e   : > { %5099 = shalt.err (!%p5096_p13)
}
 0x44f   : > { %4283 = dma.vmem_to_hbm [thread:$0]  (%p4318_p6), %s3662_s8, 96, %s5908_s7, [#allocation6]  }
 0x450   : > { %5155 = dma.done.wait (%p4318_p6), [#allocation6], 96  }
 0x451   : > { %5157 = vsyncadd (%p4318_p6), [#allocation6], 4294967200 }
 0x452 PF: > { %s26_s29 = sadd.s32 1, %s5180_s29   ;;  %s5933_s11 = sld [smem:[#allocation23_spill]] }
 0x453   : > { %p23_p0 = scmp.ge.s32.totalorder %s26_s29, 6   ;;  %s5934_s24 = smov %s5164_s25 }
 0x454   : > { %s5935_s25 = smov %s5168_s26  ;;  %s5936_s26 = smov %s5329_s17 }
 0x455   : > { %s5937_s27 = smov %s5176_s28  ;;  %25 = sbr.rel (!%p23_p0) target bundleno = 13 (0xd), region = 136 }
 0x458   : > { %s5938_s28 = smov %s5933_s11 }
 0x45a   :  { %3674 = vsyncpa [#allocation5], 1 }
 0x45b   :  { %3676 = vsyncpa [#allocation5 + $0x1], 1 }
 0x45c   :  { %3677 = vsyncpa [#allocation8], 1 }
 0x45d   :  { %3678 = vsyncpa [#allocation11], 1 }
 0x45e   :  { %3680 = vsyncpa [#allocation11 + $0x1], 1 }
 0x45f   :  { %3681 = vsyncpa [#allocation14], 1 }
 0x460   :  { %3683 = vsyncpa [#allocation14 + $0x1], 1 }
 0x461   :  { %3684 = vsyncpa [#allocation6], 1 }
 0x462   :  { %3686 = vsyncpa [#allocation6 + $0x1], 1 }

</bundles_post_ra>
